<compile_context>
chip_gen: v6e
topology: v6e:2x2x1
jax: 0.10.0
libtpu: 0.0.40
codegen_flags: <defaults>
</compile_context>

<pallas_src>
import functools

import jax
import jax.numpy as jnp
from jax import lax
from jax.experimental import pallas as pl
from jax.experimental.pallas import tpu as pltpu


_NT = (((1,), (1,)), ((), ()))   # contract last dim of both operands: A @ B^T


def _mm_nt(a, b):
    return lax.dot_general(a, b, _NT, preferred_element_type=jnp.float32)


def sa_fused_kernel(coords_ref, feat_ref, w1x_ref, w1f_ref, b1_ref, w2_ref, b2_ref,
                    out_ref, centers_ref, sel_sc,
                    *, radius2, num_centers, num_neighbors):
    """Fused FPS + ball-query grouping + SharedMLP + max-over-K for one batch element.

    coords_ref : (1, 3, N)      feat_ref : (1, C_in, N)       [both channel-first, as in PyTorch]
    w1x : (C1, 3)  w1f : (C1, C_in)  b1 : (1, C1)   w2 : (C2p, C1)  b2 : (1, C2p)
    out_ref : (1, M, C2p)   centers_ref : (1, M, 3)   sel_sc : (M, N) VMEM scratch
    """
    coords = coords_ref[0]                              # (3, N)
    feats = feat_ref[0]                                 # (C_in, N)
    n = coords.shape[1]
    m = num_centers
    k_nb = num_neighbors
    c1 = w1x_ref.shape[0]
    c2p = w2_ref.shape[0]

    # ---------------- furthest point sampling (channel-first, lane-dense) ----------------
    n_iota = lax.broadcasted_iota(jnp.int32, (1, n), 1)
    sel_sc[0:1, :] = (n_iota == 0).astype(jnp.float32)  # center 0 = point 0 (matches CUDA op)
    c0 = coords[:, 0:1]                                  # (3, 1)
    mindist0 = jnp.full((1, n), 1e10, dtype=jnp.float32)

    def fps_body(i, carry):
        mindist, last_c = carry
        d2 = jnp.sum((coords - last_c) ** 2, axis=0, keepdims=True)       # (1, N) lane-dense
        mindist = jnp.minimum(mindist, d2)
        maxv = jnp.max(mindist)
        idx = jnp.min(jnp.where(mindist == maxv, n_iota, n))              # first argmax index
        sel = (n_iota == idx).astype(jnp.float32)                         # (1, N) one-hot
        sel_sc[pl.ds(i, 1), :] = sel                                      # O(1) record of pick
        new_c = jnp.sum(coords * sel, axis=1, keepdims=True)              # (3, 1) gathered center
        return mindist, new_c

    lax.fori_loop(1, m, fps_body, (mindist0, c0))

    # gather all selected centers with ONE MXU matmul: (M, N) @ (3, N)^T -> (M, 3), exact.
    sel_mat = sel_sc[...]
    centers = _mm_nt(sel_mat, coords)                                     # (M, 3)
    centers_ref[0] = centers

    w1x = w1x_ref[...]
    w1f = w1f_ref[...]
    b1 = b1_ref[...]
    w2 = w2_ref[...]
    b2 = b2_ref[...]

    # ---------------- ball query: pairwise squared distances on the MXU ----------------
    pnorm = jnp.sum(coords * coords, axis=0, keepdims=True)               # (1, N)
    cnorm = jnp.sum(centers * centers, axis=1, keepdims=True)             # (M, 1)
    cp = jnp.dot(centers, coords, preferred_element_type=jnp.float32)     # (M, N)
    d2 = cnorm + pnorm - 2.0 * cp
    mask = d2 < radius2
    mask_f = mask.astype(jnp.float32)

    # exclusive prefix-count of in-radius points per center via strictly-lower-tri matmul.
    # bf16 operands are exact for 0/1 values; accumulation stays f32 (counts < 2^24).
    tri_bf = (lax.broadcasted_iota(jnp.int32, (n, n), 0)
              < lax.broadcasted_iota(jnp.int32, (n, n), 1)
              ).astype(jnp.float32).astype(jnp.bfloat16)
    pos = jnp.dot(mask_f.astype(jnp.bfloat16), tri_bf,
                  preferred_element_type=jnp.float32).astype(jnp.int32)   # (M, N)
    total = jnp.sum(mask_f, axis=1, keepdims=True).astype(jnp.int32)      # (M, 1)
    n_iota2 = lax.broadcasted_iota(jnp.int32, (m, n), 1)
    j0 = jnp.min(jnp.where(mask, n_iota2, n), axis=1, keepdims=True)      # first in-radius idx
    j0 = jnp.where(total > 0, j0, 0)                 # no neighbor -> index 0 (CUDA zero-init)
    pad_sel = n_iota2 == j0                                               # (M, N)

    # ---------------- batched one-hot selectors for all K neighbor slots at once ----------
    k_iota = lax.broadcasted_iota(jnp.int32, (m, k_nb, n), 1)
    sel3 = (((mask & (pos < k_nb))[:, None, :] & (pos[:, None, :] == k_iota))
            | ((k_iota >= total[:, :, None]) & pad_sel[:, None, :]))      # (M, K, N), 1 per row
    onehot = sel3.astype(jnp.float32).reshape(m * k_nb, n)                # (M*K, N)

    # ---------------- fused grouping + conv1 + conv2 + max over K ----------------
    # linearity: relu((p - c) @ W1 + b1) == relu(onehot @ (W1 @ [xyz|feat])^T - c @ W1_xyz^T + b1)
    pwT = (jnp.dot(w1x, coords, preferred_element_type=jnp.float32)
           + jnp.dot(w1f, feats, preferred_element_type=jnp.float32))     # (C1, N)
    gathered = _mm_nt(onehot, pwT)                                        # (M*K, C1)
    cw = _mm_nt(centers, w1x)                                             # (M, C1)
    cw_rep = jnp.broadcast_to(cw[:, None, :], (m, k_nb, c1)).reshape(m * k_nb, c1)
    h1 = jnp.maximum(gathered - cw_rep + b1, 0.0)                         # (M*K, C1)
    h2 = jnp.maximum(_mm_nt(h1, w2) + b2, 0.0)                            # (M*K, C2p)
    out_ref[0] = jnp.max(h2.reshape(m, k_nb, c2p), axis=1)                # (M, C2p) lane-dense


def init_mlp_params(key, in_channels, out_channels_list, eps=1e-5):
    """Deterministic Conv2d(1x1)+BatchNorm2d params, fused (eval-mode) into W', b'.

    Returned in the original Conv2d orientation: W (c_out, c_in), b (1, c_out).
    """
    params = []
    c_in = in_channels
    for c_out in out_channels_list:
        key, k1, k2, k3, k4, k5, k6 = jax.random.split(key, 7)
        w = jax.random.normal(k1, (c_out, c_in), jnp.float32) / jnp.sqrt(float(c_in))
        b = 0.05 * jax.random.normal(k2, (c_out,), jnp.float32)
        gamma = 1.0 + 0.1 * jax.random.normal(k3, (c_out,), jnp.float32)
        beta = 0.1 * jax.random.normal(k4, (c_out,), jnp.float32)
        rmean = 0.1 * jax.random.normal(k5, (c_out,), jnp.float32)
        rvar = 1.0 + 0.1 * jax.random.uniform(k6, (c_out,), jnp.float32)
        scale = gamma / jnp.sqrt(rvar + eps)
        w_fused = w * scale[:, None]                       # (c_out, c_in)
        b_fused = (b - rmean) * scale + beta               # (c_out,)
        params.append((w_fused, b_fused[None, :]))
        c_in = c_out
    return params


def pointnet_sa_forward(features, coords, params, *, num_centers, radius, num_neighbors):
    """features: (B, C_in, N), coords: (B, 3, N) -> ((B, C_out, M), (B, 3, M))."""
    features = features.astype(jnp.float32)
    coords = coords.astype(jnp.float32)
    B, c_in, N = features.shape
    M, K = num_centers, num_neighbors
    (w1, b1), (w2, b2) = params            # W (c_out, c_in) original orientation, b (1, c_out)
    c1 = w1.shape[0]
    c2 = w2.shape[0]
    c2p = -(-c2 // 128) * 128              # pad output channels -> lane-dense final store

    w1x = w1[:, :3]                        # (C1, 3)    applied to relative xyz
    w1f = w1[:, 3:]                        # (C1, C_in) applied to point features
    w2p = jnp.zeros((c2p, c1), jnp.float32).at[:c2, :].set(w2)
    b2p = jnp.zeros((1, c2p), jnp.float32).at[:, :c2].set(b2)

    kernel = functools.partial(sa_fused_kernel, radius2=float(radius) ** 2,
                               num_centers=M, num_neighbors=K)
    out_pad, centers_m3 = pl.pallas_call(
        kernel,
        out_shape=(jax.ShapeDtypeStruct((B, M, c2p), jnp.float32),
                   jax.ShapeDtypeStruct((B, M, 3), jnp.float32)),
        grid=(B,),
        in_specs=[
            pl.BlockSpec((1, 3, N), lambda b: (b, 0, 0)),       # coords, channel-first (as given)
            pl.BlockSpec((1, c_in, N), lambda b: (b, 0, 0)),    # features, channel-first (as given)
            pl.BlockSpec((c1, 3), lambda b: (0, 0)),            # fused conv1 weight, xyz columns
            pl.BlockSpec((c1, c_in), lambda b: (0, 0)),         # fused conv1 weight, feature columns
            pl.BlockSpec((1, c1), lambda b: (0, 0)),            # fused conv1 bias
            pl.BlockSpec((c2p, c1), lambda b: (0, 0)),          # fused conv2 weight (lane-padded)
            pl.BlockSpec((1, c2p), lambda b: (0, 0)),           # fused conv2 bias (lane-padded)
        ],
        out_specs=(
            pl.BlockSpec((1, M, c2p), lambda b: (b, 0, 0)),     # pooled features (padded channels)
            pl.BlockSpec((1, M, 3), lambda b: (b, 0, 0)),       # FPS center coords
        ),
        scratch_shapes=[pltpu.VMEM((M, N), jnp.float32)],       # FPS one-hot selection rows
        compiler_params=pltpu.CompilerParams(
            dimension_semantics=("parallel",),       # batch elems independent -> both v7x TCs
            vmem_limit_bytes=32 * 1024 * 1024,       # re-derive per generation at production N/M
        ),
    )(coords, features, w1x, w1f, b1, w2p, b2p)

    features_out = jnp.transpose(out_pad[:, :, :c2], (0, 2, 1))   # (B, C_out, M) PyTorch layout
    centers_coords = jnp.transpose(centers_m3, (0, 2, 1))         # (B, 3, M)
    return features_out, centers_coords


if __name__ == "__main__":
    key = jax.random.PRNGKey(0)
    B, C_in, N = 2, 4, 64
    num_centers, radius, num_neighbors = 8, 0.25, 8
    out_channels = [32, 64]   # single-scale branch, 2-layer SharedMLP

    k_feat, k_coord, k_param = jax.random.split(key, 3)
    coords = jax.random.uniform(k_coord, (B, 3, N), jnp.float32)       # points in the unit cube
    features = jax.random.normal(k_feat, (B, C_in, N), jnp.float32)

    params = init_mlp_params(k_param, C_in + 3, out_channels)          # include_coordinates=True

    fwd = jax.jit(functools.partial(pointnet_sa_forward,
                                    num_centers=num_centers,
                                    radius=radius,
                                    num_neighbors=num_neighbors))
    feats_out, centers_out = fwd(features, coords, params)
    jax.block_until_ready((feats_out, centers_out))

    assert feats_out.shape == (B, out_channels[-1], num_centers)
    assert centers_out.shape == (B, 3, num_centers)
    assert bool(jnp.all(jnp.isfinite(feats_out)))
    # FPS always selects point 0 as the first center.
    assert bool(jnp.allclose(centers_out[:, :, 0], coords[:, :, 0]))
    print("KERNEL_OK")
</pallas_src>

<mosaic_0001>
module attributes {stable_mosaic.version = 11 : i64} {
  func.func @sa_fused_kernel(%arg0: i32, %arg1: memref<1x3x64xf32, #tpu.memory_space<vmem>>, %arg2: memref<1x4x64xf32, #tpu.memory_space<vmem>>, %arg3: memref<32x3xf32, #tpu.memory_space<vmem>>, %arg4: memref<32x4xf32, #tpu.memory_space<vmem>>, %arg5: memref<1x32xf32, #tpu.memory_space<vmem>>, %arg6: memref<128x32xf32, #tpu.memory_space<vmem>>, %arg7: memref<1x128xf32, #tpu.memory_space<vmem>>, %arg8: memref<1x8x128xf32, #tpu.memory_space<vmem>>, %arg9: memref<1x8x3xf32, #tpu.memory_space<vmem>>, %arg10: memref<8x64xf32, #tpu.memory_space<vmem>>) attributes {dimension_semantics = [#tpu.dimension_semantics<parallel>], iteration_bounds = array<i64: 2>, scalar_prefetch = 0 : i64, scratch_operands = 1 : i64, tpu.core_type = #tpu.core_type<tc>, window_params = [{transform_indices = @transform_0, window_bounds = array<i64: 1, 3, 64>}, {transform_indices = @transform_1, window_bounds = array<i64: 1, 4, 64>}, {pipeline_mode = #tpu.pipeline_mode<synchronous>, transform_indices = @transform_2, window_bounds = array<i64: 32, 3>}, {pipeline_mode = #tpu.pipeline_mode<synchronous>, transform_indices = @transform_3, window_bounds = array<i64: 32, 4>}, {pipeline_mode = #tpu.pipeline_mode<synchronous>, transform_indices = @transform_4, window_bounds = array<i64: 1, 32>}, {pipeline_mode = #tpu.pipeline_mode<synchronous>, transform_indices = @transform_5, window_bounds = array<i64: 128, 32>}, {pipeline_mode = #tpu.pipeline_mode<synchronous>, transform_indices = @transform_6, window_bounds = array<i64: 1, 128>}, {transform_indices = @transform_7, window_bounds = array<i64: 1, 8, 128>}, {transform_indices = @transform_8, window_bounds = array<i64: 1, 8, 3>}]} {
    %c0 = arith.constant 0 : index
    %c0_0 = arith.constant 0 : index
    %c0_1 = arith.constant 0 : index
    %0 = vector.load %arg1[%c0, %c0_0, %c0_1] : memref<1x3x64xf32, #tpu.memory_space<vmem>>, vector<1x3x64xf32>
    %1 = vector.shape_cast %0 : vector<1x3x64xf32> to vector<3x64xf32>
    %c0_2 = arith.constant 0 : index
    %c0_3 = arith.constant 0 : index
    %c0_4 = arith.constant 0 : index
    %2 = vector.load %arg2[%c0_2, %c0_3, %c0_4] : memref<1x4x64xf32, #tpu.memory_space<vmem>>, vector<1x4x64xf32>
    %3 = vector.shape_cast %2 : vector<1x4x64xf32> to vector<4x64xf32>
    %4 = tpu.iota {dimensions = array<i32: 1>} : vector<1x64xi32>
    %c0_i32 = arith.constant 0 : i32
    %5 = vector.broadcast %c0_i32 : i32 to vector<1x64xi32>
    %6 = arith.cmpi eq, %4, %5 : vector<1x64xi32>
    %7 = arith.extui %6 : vector<1x64xi1> to vector<1x64xi32>
    %8 = arith.sitofp %7 : vector<1x64xi32> to vector<1x64xf32>
    %c0_5 = arith.constant 0 : index
    %c0_6 = arith.constant 0 : index
    %9 = vector.load %arg10[%c0_5, %c0_6] : memref<8x64xf32, #tpu.memory_space<vmem>>, vector<1x64xf32>
    tpu.vector_store %arg10[%c0_5, %c0_6], %8 {strides = array<i32>} : memref<8x64xf32, #tpu.memory_space<vmem>>, vector<1x64xf32>,
    %10 = vector.extract_strided_slice %1 {offsets = [0, 0], sizes = [3, 1], strides = [1, 1]} : vector<3x64xf32> to vector<3x1xf32>
    %cst = arith.constant 1.000000e+10 : f32
    %11 = vector.broadcast %cst : f32 to vector<1x64xf32>
    %c1_i32 = arith.constant 1 : i32
    %c7_i32 = arith.constant 7 : i32
    %12 = arith.addi %c1_i32, %c7_i32 : i32
    %c1_i32_7 = arith.constant 1 : i32
    %13:2 = scf.for %arg11 = %c1_i32 to %12 step %c1_i32_7 iter_args(%arg12 = %11, %arg13 = %10) -> (vector<1x64xf32>, vector<3x1xf32>)  : i32 {
      %108 = vector.broadcast %arg13 : vector<3x1xf32> to vector<3x64xf32>
      %109 = arith.subf %1, %108 : vector<3x64xf32>
      %110 = arith.mulf %109, %109 : vector<3x64xf32>
      %cst_46 = arith.constant dense<0.000000e+00> : vector<64xf32>
      %111 = vector.multi_reduction <add>, %110, %cst_46 [0] : vector<3x64xf32> to vector<64xf32>
      %112 = vector.shape_cast %111 : vector<64xf32> to vector<1x64xf32>
      %113 = arith.minimumf %arg12, %112 : vector<1x64xf32>
      %114 = vector.shape_cast %113 : vector<1x64xf32> to vector<1x1x64xf32>
      %cst_47 = arith.constant dense<0xFF800000> : vector<1xf32>
      %115 = vector.multi_reduction <maximumf>, %114, %cst_47 [1, 2] : vector<1x1x64xf32> to vector<1xf32>
      %116 = vector.shape_cast %115 : vector<1xf32> to vector<1x1x1xf32>
      %117 = vector.extract %116[0, 0, 0] : f32 from vector<1x1x1xf32>
      %118 = vector.broadcast %117 : f32 to vector<1x64xf32>
      %119 = arith.cmpf oeq, %113, %118 : vector<1x64xf32>
      %c64_i32_48 = arith.constant 64 : i32
      %120 = vector.broadcast %c64_i32_48 : i32 to vector<1x64xi32>
      %121 = arith.select %119, %4, %120 : vector<1x64xi1>, vector<1x64xi32>
      %122 = vector.shape_cast %121 : vector<1x64xi32> to vector<1x1x64xi32>
      %cst_49 = arith.constant dense<2147483647> : vector<1xi32>
      %123 = vector.multi_reduction <minsi>, %122, %cst_49 [1, 2] : vector<1x1x64xi32> to vector<1xi32>
      %124 = vector.shape_cast %123 : vector<1xi32> to vector<1x1x1xi32>
      %125 = vector.extract %124[0, 0, 0] : i32 from vector<1x1x1xi32>
      %126 = vector.broadcast %125 : i32 to vector<1x64xi32>
      %127 = arith.cmpi eq, %4, %126 : vector<1x64xi32>
      %128 = arith.extui %127 : vector<1x64xi1> to vector<1x64xi32>
      %129 = arith.sitofp %128 : vector<1x64xi32> to vector<1x64xf32>
      %130 = arith.index_cast %arg11 : i32 to index
      %c0_50 = arith.constant 0 : index
      %131 = vector.load %arg10[%130, %c0_50] : memref<8x64xf32, #tpu.memory_space<vmem>>, vector<1x64xf32>
      tpu.vector_store %arg10[%130, %c0_50], %129 {strides = array<i32>} : memref<8x64xf32, #tpu.memory_space<vmem>>, vector<1x64xf32>,
      %132 = vector.broadcast %129 : vector<1x64xf32> to vector<3x64xf32>
      %133 = arith.mulf %1, %132 : vector<3x64xf32>
      %cst_51 = arith.constant dense<0.000000e+00> : vector<3xf32>
      %134 = vector.multi_reduction <add>, %133, %cst_51 [1] : vector<3x64xf32> to vector<3xf32>
      %135 = vector.shape_cast %134 : vector<3xf32> to vector<3x1xf32>
      scf.yield %113, %135 : vector<1x64xf32>, vector<3x1xf32>
    }
    %c7_i32_8 = arith.constant 7 : i32
    %c0_9 = arith.constant 0 : index
    %c0_10 = arith.constant 0 : index
    %14 = vector.load %arg10[%c0_9, %c0_10] : memref<8x64xf32, #tpu.memory_space<vmem>>, vector<8x64xf32>
    %cst_11 = arith.constant dense<0.000000e+00> : vector<8x3xf32>
    %15 = tpu.matmul %14, %1, %cst_11 {dimension_numbers = #tpu.dot_dimension_numbers<[1], [1], [0], [0], [0, 0, 1, 0], [], []>} : vector<8x64xf32>, vector<3x64xf32>, vector<8x3xf32> -> vector<8x3xf32>
    %c0_12 = arith.constant 0 : index
    %c0_13 = arith.constant 0 : index
    %c0_14 = arith.constant 0 : index
    %16 = vector.load %arg9[%c0_12, %c0_13, %c0_14] : memref<1x8x3xf32, #tpu.memory_space<vmem>>, vector<1x8x3xf32>
    %17 = vector.shape_cast %16 : vector<1x8x3xf32> to vector<8x3xf32>
    %18 = vector.shape_cast %15 : vector<8x3xf32> to vector<1x8x3xf32>
    tpu.vector_store %arg9[%c0_12, %c0_13, %c0_14], %18 {strides = array<i32>} : memref<1x8x3xf32, #tpu.memory_space<vmem>>, vector<1x8x3xf32>,
    %c0_15 = arith.constant 0 : index
    %c0_16 = arith.constant 0 : index
    %19 = vector.load %arg3[%c0_15, %c0_16] : memref<32x3xf32, #tpu.memory_space<vmem>>, vector<32x3xf32>
    %c0_17 = arith.constant 0 : index
    %c0_18 = arith.constant 0 : index
    %20 = vector.load %arg4[%c0_17, %c0_18] : memref<32x4xf32, #tpu.memory_space<vmem>>, vector<32x4xf32>
    %c0_19 = arith.constant 0 : index
    %c0_20 = arith.constant 0 : index
    %21 = vector.load %arg5[%c0_19, %c0_20] : memref<1x32xf32, #tpu.memory_space<vmem>>, vector<1x32xf32>
    %c0_21 = arith.constant 0 : index
    %c0_22 = arith.constant 0 : index
    %22 = vector.load %arg6[%c0_21, %c0_22] : memref<128x32xf32, #tpu.memory_space<vmem>>, vector<128x32xf32>
    %c0_23 = arith.constant 0 : index
    %c0_24 = arith.constant 0 : index
    %23 = vector.load %arg7[%c0_23, %c0_24] : memref<1x128xf32, #tpu.memory_space<vmem>>, vector<1x128xf32>
    %24 = arith.mulf %1, %1 : vector<3x64xf32>
    %cst_25 = arith.constant dense<0.000000e+00> : vector<64xf32>
    %25 = vector.multi_reduction <add>, %24, %cst_25 [0] : vector<3x64xf32> to vector<64xf32>
    %26 = vector.shape_cast %25 : vector<64xf32> to vector<1x64xf32>
    %27 = arith.mulf %15, %15 : vector<8x3xf32>
    %cst_26 = arith.constant dense<0.000000e+00> : vector<8xf32>
    %28 = vector.multi_reduction <add>, %27, %cst_26 [1] : vector<8x3xf32> to vector<8xf32>
    %29 = vector.shape_cast %28 : vector<8xf32> to vector<8x1xf32>
    %cst_27 = arith.constant dense<0.000000e+00> : vector<8x64xf32>
    %30 = tpu.matmul %15, %1, %cst_27 {dimension_numbers = #tpu.dot_dimension_numbers<[1], [0], [0], [1], [0, 0, 1, 1], [], []>} : vector<8x3xf32>, vector<3x64xf32>, vector<8x64xf32> -> vector<8x64xf32>
    %31 = vector.broadcast %29 : vector<8x1xf32> to vector<8x64xf32>
    %32 = vector.broadcast %26 : vector<1x64xf32> to vector<8x64xf32>
    %33 = arith.addf %31, %32 : vector<8x64xf32>
    %cst_28 = arith.constant 2.000000e+00 : f32
    %34 = vector.broadcast %cst_28 : f32 to vector<8x64xf32>
    %35 = arith.mulf %34, %30 : vector<8x64xf32>
    %36 = arith.subf %33, %35 : vector<8x64xf32>
    %cst_29 = arith.constant 6.250000e-02 : f32
    %37 = vector.broadcast %cst_29 : f32 to vector<8x64xf32>
    %38 = arith.cmpf olt, %36, %37 : vector<8x64xf32>
    %39 = arith.extui %38 : vector<8x64xi1> to vector<8x64xi32>
    %40 = arith.sitofp %39 : vector<8x64xi32> to vector<8x64xf32>
    %41 = tpu.iota {dimensions = array<i32: 0>} : vector<64x64xi32>
    %42 = tpu.iota {dimensions = array<i32: 1>} : vector<64x64xi32>
    %43 = arith.cmpi slt, %41, %42 : vector<64x64xi32>
    %44 = arith.extui %43 : vector<64x64xi1> to vector<64x64xi32>
    %45 = arith.sitofp %44 : vector<64x64xi32> to vector<64x64xf32>
    %46 = arith.truncf %45 : vector<64x64xf32> to vector<64x64xbf16>
    %47 = arith.truncf %40 : vector<8x64xf32> to vector<8x64xbf16>
    %cst_30 = arith.constant dense<0.000000e+00> : vector<8x64xf32>
    %48 = tpu.matmul %47, %46, %cst_30 {dimension_numbers = #tpu.dot_dimension_numbers<[1], [0], [0], [1], [0, 0, 1, 1], [], []>} : vector<8x64xbf16>, vector<64x64xbf16>, vector<8x64xf32> -> vector<8x64xf32>
    %49 = arith.fptosi %48 : vector<8x64xf32> to vector<8x64xi32>
    %cst_31 = arith.constant dense<0.000000e+00> : vector<8xf32>
    %50 = vector.multi_reduction <add>, %40, %cst_31 [1] : vector<8x64xf32> to vector<8xf32>
    %51 = vector.shape_cast %50 : vector<8xf32> to vector<8x1xf32>
    %52 = arith.fptosi %51 : vector<8x1xf32> to vector<8x1xi32>
    %53 = tpu.iota {dimensions = array<i32: 1>} : vector<8x64xi32>
    %c64_i32 = arith.constant 64 : i32
    %54 = vector.broadcast %c64_i32 : i32 to vector<8x64xi32>
    %55 = arith.select %38, %53, %54 : vector<8x64xi1>, vector<8x64xi32>
    %cst_32 = arith.constant dense<2147483647> : vector<8xi32>
    %56 = vector.multi_reduction <minsi>, %55, %cst_32 [1] : vector<8x64xi32> to vector<8xi32>
    %57 = vector.shape_cast %56 : vector<8xi32> to vector<8x1xi32>
    %c0_i32_33 = arith.constant 0 : i32
    %58 = vector.broadcast %c0_i32_33 : i32 to vector<8x1xi32>
    %59 = arith.cmpi sgt, %52, %58 : vector<8x1xi32>
    %c0_i32_34 = arith.constant 0 : i32
    %60 = vector.broadcast %c0_i32_34 : i32 to vector<8x1xi32>
    %61 = arith.select %59, %57, %60 : vector<8x1xi1>, vector<8x1xi32>
    %62 = vector.broadcast %61 : vector<8x1xi32> to vector<8x64xi32>
    %63 = arith.cmpi eq, %53, %62 : vector<8x64xi32>
    %64 = tpu.iota {dimensions = array<i32: 1>} : vector<8x8x64xi32>
    %c8_i32 = arith.constant 8 : i32
    %65 = vector.broadcast %c8_i32 : i32 to vector<8x64xi32>
    %66 = arith.cmpi slt, %49, %65 : vector<8x64xi32>
    %67 = arith.andi %38, %66 : vector<8x64xi1>
    %68 = vector.shape_cast %67 : vector<8x64xi1> to vector<8x1x64xi1>
    %69 = vector.shape_cast %49 : vector<8x64xi32> to vector<8x1x64xi32>
    %70 = vector.broadcast %69 : vector<8x1x64xi32> to vector<8x8x64xi32>
    %71 = arith.cmpi eq, %70, %64 : vector<8x8x64xi32>
    %72 = vector.broadcast %68 : vector<8x1x64xi1> to vector<8x8x64xi1>
    %73 = arith.andi %72, %71 : vector<8x8x64xi1>
    %74 = vector.shape_cast %52 : vector<8x1xi32> to vector<8x1x1xi32>
    %75 = vector.broadcast %74 : vector<8x1x1xi32> to vector<8x8x64xi32>
    %76 = arith.cmpi sge, %64, %75 : vector<8x8x64xi32>
    %77 = vector.shape_cast %63 : vector<8x64xi1> to vector<8x1x64xi1>
    %78 = vector.broadcast %77 : vector<8x1x64xi1> to vector<8x8x64xi1>
    %79 = arith.andi %76, %78 : vector<8x8x64xi1>
    %80 = arith.ori %73, %79 : vector<8x8x64xi1>
    %81 = arith.extui %80 : vector<8x8x64xi1> to vector<8x8x64xi32>
    %82 = arith.sitofp %81 : vector<8x8x64xi32> to vector<8x8x64xf32>
    %83 = vector.shape_cast %82 : vector<8x8x64xf32> to vector<64x64xf32>
    %cst_35 = arith.constant dense<0.000000e+00> : vector<32x64xf32>
    %84 = tpu.matmul %19, %1, %cst_35 {dimension_numbers = #tpu.dot_dimension_numbers<[1], [0], [0], [1], [0, 0, 1, 1], [], []>} : vector<32x3xf32>, vector<3x64xf32>, vector<32x64xf32> -> vector<32x64xf32>
    %cst_36 = arith.constant dense<0.000000e+00> : vector<32x64xf32>
    %85 = tpu.matmul %20, %3, %cst_36 {dimension_numbers = #tpu.dot_dimension_numbers<[1], [0], [0], [1], [0, 0, 1, 1], [], []>} : vector<32x4xf32>, vector<4x64xf32>, vector<32x64xf32> -> vector<32x64xf32>
    %86 = arith.addf %84, %85 : vector<32x64xf32>
    %cst_37 = arith.constant dense<0.000000e+00> : vector<64x32xf32>
    %87 = tpu.matmul %83, %86, %cst_37 {dimension_numbers = #tpu.dot_dimension_numbers<[1], [1], [0], [0], [0, 0, 1, 0], [], []>} : vector<64x64xf32>, vector<32x64xf32>, vector<64x32xf32> -> vector<64x32xf32>
    %cst_38 = arith.constant dense<0.000000e+00> : vector<8x32xf32>
    %88 = tpu.matmul %15, %19, %cst_38 {dimension_numbers = #tpu.dot_dimension_numbers<[1], [1], [0], [0], [0, 0, 1, 0], [], []>} : vector<8x3xf32>, vector<32x3xf32>, vector<8x32xf32> -> vector<8x32xf32>
    %89 = vector.shape_cast %88 : vector<8x32xf32> to vector<8x1x32xf32>
    %90 = vector.shape_cast %89 : vector<8x1x32xf32> to vector<8x1x32xf32>
    %91 = vector.broadcast %90 : vector<8x1x32xf32> to vector<8x8x32xf32>
    %92 = vector.shape_cast %91 : vector<8x8x32xf32> to vector<64x32xf32>
    %93 = arith.subf %87, %92 : vector<64x32xf32>
    %94 = vector.broadcast %21 : vector<1x32xf32> to vector<64x32xf32>
    %95 = arith.addf %93, %94 : vector<64x32xf32>
    %cst_39 = arith.constant 0.000000e+00 : f32
    %96 = vector.broadcast %cst_39 : f32 to vector<64x32xf32>
    %97 = arith.maximumf %95, %96 : vector<64x32xf32>
    %cst_40 = arith.constant dense<0.000000e+00> : vector<64x128xf32>
    %98 = tpu.matmul %97, %22, %cst_40 {dimension_numbers = #tpu.dot_dimension_numbers<[1], [1], [0], [0], [0, 0, 1, 0], [], []>} : vector<64x32xf32>, vector<128x32xf32>, vector<64x128xf32> -> vector<64x128xf32>
    %99 = vector.broadcast %23 : vector<1x128xf32> to vector<64x128xf32>
    %100 = arith.addf %98, %99 : vector<64x128xf32>
    %cst_41 = arith.constant 0.000000e+00 : f32
    %101 = vector.broadcast %cst_41 : f32 to vector<64x128xf32>
    %102 = arith.maximumf %100, %101 : vector<64x128xf32>
    %103 = vector.shape_cast %102 : vector<64x128xf32> to vector<8x8x128xf32>
    %cst_42 = arith.constant dense<0xFF800000> : vector<8x128xf32>
    %104 = vector.multi_reduction <maximumf>, %103, %cst_42 [1] : vector<8x8x128xf32> to vector<8x128xf32>
    %c0_43 = arith.constant 0 : index
    %c0_44 = arith.constant 0 : index
    %c0_45 = arith.constant 0 : index
    %105 = vector.load %arg8[%c0_43, %c0_44, %c0_45] : memref<1x8x128xf32, #tpu.memory_space<vmem>>, vector<1x8x128xf32>
    %106 = vector.shape_cast %105 : vector<1x8x128xf32> to vector<8x128xf32>
    %107 = vector.shape_cast %104 : vector<8x128xf32> to vector<1x8x128xf32>
    tpu.vector_store %arg8[%c0_43, %c0_44, %c0_45], %107 {strides = array<i32>} : memref<1x8x128xf32, #tpu.memory_space<vmem>>, vector<1x8x128xf32>,
    return
  }
  func.func @transform_0(%arg0: i32) -> (i32, i32, i32) {
    %c0_i32 = arith.constant 0 : i32
    %c0_i32_0 = arith.constant 0 : i32
    %c0_i32_1 = arith.constant 0 : i32
    return %arg0, %c0_i32, %c0_i32_0 : i32, i32, i32
  }
  func.func @transform_1(%arg0: i32) -> (i32, i32, i32) {
    %c0_i32 = arith.constant 0 : i32
    %c0_i32_0 = arith.constant 0 : i32
    %c0_i32_1 = arith.constant 0 : i32
    return %arg0, %c0_i32, %c0_i32_0 : i32, i32, i32
  }
  func.func @transform_2(%arg0: i32) -> (i32, i32) {
    %c0_i32 = arith.constant 0 : i32
    %c0_i32_0 = arith.constant 0 : i32
    %c0_i32_1 = arith.constant 0 : i32
    return %c0_i32, %c0_i32_0 : i32, i32
  }
  func.func @transform_3(%arg0: i32) -> (i32, i32) {
    %c0_i32 = arith.constant 0 : i32
    %c0_i32_0 = arith.constant 0 : i32
    %c0_i32_1 = arith.constant 0 : i32
    return %c0_i32, %c0_i32_0 : i32, i32
  }
  func.func @transform_4(%arg0: i32) -> (i32, i32) {
    %c0_i32 = arith.constant 0 : i32
    %c0_i32_0 = arith.constant 0 : i32
    %c0_i32_1 = arith.constant 0 : i32
    return %c0_i32, %c0_i32_0 : i32, i32
  }
  func.func @transform_5(%arg0: i32) -> (i32, i32) {
    %c0_i32 = arith.constant 0 : i32
    %c0_i32_0 = arith.constant 0 : i32
    %c0_i32_1 = arith.constant 0 : i32
    return %c0_i32, %c0_i32_0 : i32, i32
  }
  func.func @transform_6(%arg0: i32) -> (i32, i32) {
    %c0_i32 = arith.constant 0 : i32
    %c0_i32_0 = arith.constant 0 : i32
    %c0_i32_1 = arith.constant 0 : i32
    return %c0_i32, %c0_i32_0 : i32, i32
  }
  func.func @transform_7(%arg0: i32) -> (i32, i32, i32) {
    %c0_i32 = arith.constant 0 : i32
    %c0_i32_0 = arith.constant 0 : i32
    %c0_i32_1 = arith.constant 0 : i32
    return %arg0, %c0_i32, %c0_i32_0 : i32, i32, i32
  }
  func.func @transform_8(%arg0: i32) -> (i32, i32, i32) {
    %c0_i32 = arith.constant 0 : i32
    %c0_i32_0 = arith.constant 0 : i32
    %c0_i32_1 = arith.constant 0 : i32
    return %arg0, %c0_i32, %c0_i32_0 : i32, i32, i32
  }
}

</mosaic_0001>

<bundles_post_ra>
// kernel: pointnet_sa_forward.1
= control target key start
LH: loop header
LB: loop body
LE: loop exit
PB: predicated region body
PF: predicated region fallthrough
CT: control target
= control target key end

     0   :  { %s2389_s27 = smov 0   ;;  %s3014_s0 = inlined_call_operand.vmem [shape: f32[2,3,64], index: 0, kind: input, shape index: {}]   ;;  %s3015_s1 = inlined_call_operand.vmem [shape: f32[2,4,64], index: 1, kind: input, shape index: {}]   ;;  %s3016_s2 = inlined_call_operand.vmem [shape: f32[32,3], index: 2, kind: input, shape index: {}]   ;;  %s3017_s3 = inlined_call_operand.vmem [shape: f32[32,4], index: 3, kind: input, shape index: {}]   ;;  %s3018_s4 = inlined_call_operand.vmem [shape: f32[1,32], index: 4, kind: input, shape index: {}]   ;;  %s3019_s5 = inlined_call_operand.vmem [shape: f32[128,32], index: 5, kind: input, shape index: {}]   ;;  %s3020_s6 = inlined_call_operand.vmem [shape: f32[1,128], index: 6, kind: input, shape index: {}]   ;;  %s3021_s7 = inlined_call_operand.vmem [shape: f32[2,8,128], index: 7, kind: output, shape index: {0}]   ;;  %s3022_s8 = inlined_call_operand.vmem [shape: f32[2,8,3], index: 8, kind: output, shape index: {1}]  }
   0x1 LB: > { %s1988_s28 = sadd.s32 4294967295, %s2323_s27   ;;  %p1992_p0 = scmp.ge.s32.totalorder %s2323_s27, 1  ;;  %s2323_s27 = sphi %s2389_s27, %s19_s27  }
   0x2   : > { %p273_p1 = scmp.lt.s32.totalorder %s2323_s27, 3 }
   0x4   : > { %p274_p2 = pnand %p1992_p0, %p273_p1 }
   0x5   : > { %p313_p3 = scmp.lt.s32.totalorder (!%p274_p2), %s1988_s28, 1  ;;  %s2428_s21 = smov (!%p274_p2), 1  }
   0x6   : > { %277 = sbr.rel (%p274_p2) target bundleno = 1859 (0x743), region = 48 }
   0xb   : > { %v332_v0 = vlaneseq  ;;  %s3125_s28 = smov (!%p313_p3, %s1988_s28), 1  ;;  %vm337_vm0 = vcmask 516096   ;;  %v2337_v2 = vmov 0.0   ;;  %v2426_v7 = vmov 1e+10  }
   0xc   : > { %s1993_s29 = sshll.u32 %s3125_s28, 2  ;;  %s1995_s30 = sshll.u32 %s3125_s28, 3 }
   0xd   : > { %v2398_v1 = vand.u32 127, %v332_v0  ;;  %s316_s11 = scalar_lea.vmem %s3014_s0, %s1993_s29  ;;  %s320_s14 = scalar_lea.vmem %s3015_s1, %s1993_s29 }
   0xe   : > { %s2411_s17 = scalar_lea.vmem %s3021_s7, %s1995_s30  ;;  %s2416_s20 = scalar_lea.vmem %s3022_s8, %s1995_s30  ;;  %v2418_v4 = vld [vmem:[%s316_s11] sm:$0x7]  }
   0xf   : > { %vm334_vm1 = vcmp.eq.s32.totalorder %v2398_v1, 0  ;;  %v2420_v5 = vld [vmem:[%s320_s14] sm:$0xf]  ;;  %v3031_v6 = vmov %v2418_v4 }
  0x10   : > { %v1997_v3 = vsel %vm334_vm1, 1.0, %v2337_v2 }
  0x11   : > { %338 = vst.msk [vmem:[#allocation2] sm:$0x1] %vm337_vm0, %v1997_v3 }
  0x12 LB: >> { %v2338_v8 = vmov 0   ;;  %vm354_vm2 = vcmask 518144   ;;  %vm3026_vm3 = vcmask 523264   ;;  %v2339_v36 = vmov 0.0   ;;  %s391_s24 = scalar_lea.vmem [#allocation2], %s2335_s21  ;;  %s344_s21 = sadd.s32 1, %s2335_s21   ;;  %s2335_s21 = sphi %s2428_s21, %s344_s21   ;;  %v2331_v7 = vphi %v2426_v7, %v362_v7   ;;  %v2327_v6 = vphi %v3031_v6, %v396_v6  }
  0x13   : >> { %2304 = vset.pattern.permute.xlu0 %v2338_v8  ;;  %p341_p4 = scmp.ge.s32.totalorder %s344_s21, 8  }
  0x14   : >> { %349 = vperm.xlu0 %2304, %v2327_v6   ;;  %2144 = vmatprep.subr.mxu1 (%p341_p4), %v2337_v2  ;;  %vm3024_vm7 = vmmov (%p341_p4), 0   ;;  %vm519_vm8 = vcmask (%p341_p4), 1042432   ;;  %vm3025_vm9 = vcmask (%p341_p4), 23552   ;;  %v2477_v45 = vshrl.u32 (%p341_p4), %v332_v0, 7 }
  0x15   : > { %2145 = vmatpush3.xpose.msk.msra.mxu1 (%p341_p4), %vm3026_vm3, %v2418_v4  ;;  %2146 = vmatprep.mubr.msk.f32.mxu1 (%p341_p4), %vm3024_vm7, %v2337_v2  ;;  %v2341_v50 = vmov (%p341_p4), 1.0|1.0   ;;  %v503_v54 = vmul.f32 (%p341_p4), %v2418_v4, %v2418_v4 }
  0x16   : > { %2149 = vmatprep.subr.mxu1 (%p341_p4), %v2337_v2  ;;  %v605_v46 = vadd.s32 (%p341_p4), 48, %v2477_v45  ;;  %v606_v47 = vadd.s32 (%p341_p4), 56, %v2477_v45  ;;  %v603_v48 = vadd.s32 (%p341_p4), 32, %v2477_v45  ;;  %v604_v49 = vadd.s32 (%p341_p4), 40, %v2477_v45 }
  0x17   : > { %v601_v51 = vadd.s32 (%p341_p4), 16, %v2477_v45  ;;  %v602_v52 = vadd.s32 (%p341_p4), 24, %v2477_v45  ;;  %v600_v53 = vadd.s32 (%p341_p4), 8, %v2477_v45  ;;  %v505_v55 = vsel (%p341_p4), %vm354_vm2, %v503_v54, 0.0 }
  0x18   : > { %vm613_vm10 = vcmp.lt.s32.totalorder (%p341_p4), %v605_v46, %v2398_v1  ;;  %vm614_vm11 = vcmp.lt.s32.totalorder (%p341_p4), %v606_v47, %v2398_v1  ;;  %vm611_vm12 = vcmp.lt.s32.totalorder (%p341_p4), %v603_v48, %v2398_v1  ;;  %vm612_vm13 = vcmp.lt.s32.totalorder (%p341_p4), %v604_v49, %v2398_v1  ;;  %v494_v48 = vld [vmem:[%s3019_s5 + $0x40] sm:$0xff] (%p341_p4) }
  0x19   : > { %vm2012_vm14 = vmpackc.low (%p341_p4), %vm614_vm11, %vm613_vm10  ;;  %vm610_vm1 = vcmp.lt.s32.totalorder (%p341_p4), %v602_v52, %v2398_v1  ;;  %vm1099_vm11 = vcmask (%p341_p4), 1043456   ;;  %v506_v56 = vrot.slane (%p341_p4), %v505_v55, 4 }
  0x1a   : > { %vm2014_vm15 = vmpackc.low (%p341_p4), %vm612_vm13, %vm611_vm12  ;;  %vm3023_vm13 = vcmask (%p341_p4), 261120  }
  0x1b   : > { %v507_v57 = vadd.f32 (%p341_p4), %v506_v56, %v505_v55  ;;  %v2342_v55 = vmov (%p341_p4), 1966171168  }
  0x1c   : > { %v708_v56 = vunpack.c.l.s4 (%p341_p4), %v2342_v55 }
  0x1d   : > { %v508_v58 = vrot.slane (%p341_p4), %v507_v57, 2 }
  0x1f   : > { %v509_v59 = vadd.f32 (%p341_p4), %v508_v58, %v507_v57  ;;  %v709_v57 = vunpack.c.0.s8 (%p341_p4), %v708_v56  ;;  %v2343_v58 = vmov (%p341_p4), 0  }
  0x21   : > { %v510_v60 = vrot.slane (%p341_p4), %v509_v59, 1 }
  0x23   : > { %v511_v61 = vadd.f32 (%p341_p4), %v510_v60, %v509_v59  ;;  %v2627_v60 = vsub.s32 (%p341_p4), %v709_v57, %v2477_v45 }
  0x8f   : >> { %v350_v9 = vpop.permute.xlu0 %349 }
  0x90   : >> { %v352_v10 = vsub.f32 %v2418_v4, %v350_v9 }
  0x92   : >> { %v353_v11 = vmul.f32 %v352_v10, %v352_v10 }
  0x94   : >> { %v355_v12 = vsel %vm354_vm2, %v353_v11, 0.0 }
  0x95   : >> { %v356_v13 = vrot.slane %v355_v12, 4 }
  0x97   : >> { %v357_v14 = vadd.f32 %v356_v13, %v355_v12 }
  0x99   : >> { %v358_v15 = vrot.slane %v357_v14, 2 }
  0x9b   : >> { %v359_v16 = vadd.f32 %v358_v15, %v357_v14  ;;  %v481_v14 = vld [vmem:[%s3017_s3] sm:$0xff] (%p341_p4) }
  0x9d   : >> { %v360_v17 = vrot.slane %v359_v16, 1 }
  0x9f   : >> { %v361_v18 = vadd.f32 %v360_v17, %v359_v16  ;;  %v482_v17 = vld [vmem:[%s3017_s3 + $0x8] sm:$0xff] (%p341_p4) }
  0xa1   : >> { %v362_v7 = vmin.f32 %v2331_v7, %v361_v18   ;;  %v483_v18 = vld [vmem:[%s3017_s3 + $0x10] sm:$0xff] (%p341_p4) }
  0xa3   : >> { %v364_v19 = vsel %vm3026_vm3, %v362_v7, -inf }
  0xa4   : >> { %365 = vmax.xlane.f32.xlu0 %v364_v19  ;;  %v2540_v19 = vld [vmem:[%s3016_s2] sm:$0xff] (%p341_p4) }
 0x12d   : >> { %v366_v20 = vpop.xlane.xlu0 %365 }
 0x12e   : >> { %2257 = vpush %v366_v20  ;;  %v2548_v20 = vld [vmem:[%s3016_s2 + $0x8] sm:$0xff] (%p341_p4) }
 0x15f   : >> { %s2258_s22 = spop %2257 }
 0x160   : >> { %v368_v21 = vstv %s2258_s22 }
 0x161   : >> { %vm369_vm4 = vcmp.eq.f32.partialorder %v362_v7, %v368_v21  ;;  %v2553_v21 = vld [vmem:[%s3016_s2 + $0x10] sm:$0xff] (%p341_p4) }
 0x162   : >> { %v370_v22 = vsel %vm369_vm4, %v2398_v1, 64 }
 0x163   : >> { %v371_v23 = vsel %vm3026_vm3, %v370_v22, 2147483647 }
 0x164   : >> { %v373_v24 = vshra.s32 %v371_v23, 16  ;;  %v372_v26 = vand.u32 65535, %v371_v23 }
 0x166   : >> { %v375_v25 = vcvt.s32.f32 %v373_v24  ;;  %v374_v28 = vcvt.s32.f32 %v372_v26  ;;  %v501_v26 = vld [vmem:[%s3019_s5 + $0x78] sm:$0xff] (%p341_p4) }
 0x167   : > { %2213 = vmatprep.subr.msk.mxu0 (%p341_p4), %vm3023_vm13, %v501_v26 }
 0x168   : >> { %376 = vmin.xlane.f32.xlu1 %v375_v25  ;;  %2214 = vmatpush3.xpose.msk.msra.mxu0 (%p341_p4), %vm3023_vm13, %v501_v26 }
 0x1f1   : >> { %v377_v27 = vpop.xlane.xlu1 %376 }
 0x1f2   : >> { %vm378_vm5 = vcmp.eq.f32.partialorder %v375_v25, %v377_v27  ;;  %v383_v30 = vcvt.f32.s32 %v377_v27  ;;  %v500_v27 = vld [vmem:[%s3019_s5 + $0x70] sm:$0xff] (%p341_p4) }
 0x1f3   : >> { %v379_v29 = vsel %vm378_vm5, %v374_v28, inf  ;;  %vm607_vm5 = vcmp.lt.s32.totalorder (%p341_p4), %v2477_v45, %v2398_v1  ;;  %2215 = vmatprep.subr.msk.mxu0 (%p341_p4), %vm3023_vm13, %v500_v27 }
 0x1f4   : >> { %380 = vmin.xlane.f32.xlu1 %v379_v29  ;;  %v384_v32 = vshll.u32 %v383_v30, 16  ;;  %v499_v30 = vld [vmem:[%s3019_s5 + $0x68] sm:$0xff] (%p341_p4)  ;;  %2216 = vmatpush3.xpose.msk.msra.mxu0 (%p341_p4), %vm3023_vm13, %v500_v27  ;;  %v934_v27 = vsub.s32 (%p341_p4), 6, %v2477_v45 }
 0x1f5   : > { %2217 = vmatprep.subr.msk.mxu0 (%p341_p4), %vm3023_vm13, %v499_v30 }
 0x1f8   : > { %2218 = vmatpush3.xpose.msk.msra.mxu0 (%p341_p4), %vm3023_vm13, %v499_v30 }
 0x27d   : >> { %v381_v31 = vpop.xlane.xlu1 %380 }
 0x27e   : >> { %v382_v33 = vcvt.f32.s32 %v381_v31 }
 0x280   : >> { %v385_v34 = vadd.s32 %v384_v32, %v382_v33  ;;  %v498_v33 = vld [vmem:[%s3019_s5 + $0x60] sm:$0xff] (%p341_p4) }
 0x281   : > { %2219 = vmatprep.subr.msk.mxu0 (%p341_p4), %vm3023_vm13, %v498_v33 }
 0x282   : >> { %2259 = vpush %v385_v34  ;;  %2220 = vmatpush3.xpose.msk.msra.mxu0 (%p341_p4), %vm3023_vm13, %v498_v33 }
 0x2b3   : >> { %s2260_s23 = spop %2259 }
 0x2b4   : >> { %v387_v35 = vstv %s2260_s23 }
 0x2b5   : >> { %vm388_vm6 = vcmp.eq.s32.totalorder %v2398_v1, %v387_v35 }
 0x2b6   : >> { %v1998_v37 = vsel %vm388_vm6, 1.0, %v2339_v36  ;;  %vm608_vm6 = vcmp.lt.s32.totalorder (%p341_p4), %v600_v53, %v2398_v1  ;;  %v497_v36 = vld [vmem:[%s3019_s5 + $0x58] sm:$0xff] (%p341_p4) }
 0x2b7   : >> { %392 = vst.msk [vmem:[%s391_s24] sm:$0x1] %vm337_vm0, %v1998_v37  ;;  %v393_v38 = vmul.f32 %v1998_v37, %v2418_v4  ;;  %vm609_vm0 = vcmp.lt.s32.totalorder (%p341_p4), %v601_v51, %v2398_v1  ;;  %vm2018_vm10 = vmpackc.low (%p341_p4), %vm608_vm6, %vm607_vm5  ;;  %2221 = vmatprep.subr.msk.mxu0 (%p341_p4), %vm3023_vm13, %v497_v36  ;;  %v493_v51 = vld [vmem:[%s3019_s5 + $0x38] sm:$0xff] (%p341_p4) }
 0x2b8   : > { %vm2016_vm4 = vmpackc.low (%p341_p4), %vm610_vm1, %vm609_vm0  ;;  %2222 = vmatpush3.xpose.msk.msra.mxu0 (%p341_p4), %vm3023_vm13, %v497_v36 }
 0x2b9   : >> { %v394_v39 = vsel %vm354_vm2, %v393_v38, 0.0  ;;  %vm1086_vm2 = vcmask (%p341_p4), 31744  }
 0x2ba   : >> { %395 = vadd.xlane.f32.xlu1 %v394_v39  ;;  %v496_v39 = vld [vmem:[%s3019_s5 + $0x50] sm:$0xff] (%p341_p4) }
 0x2bb   : > { %2223 = vmatprep.subr.msk.mxu0 (%p341_p4), %vm3023_vm13, %v496_v39 }
 0x2bc   : > { %2224 = vmatpush3.xpose.msk.msra.mxu0 (%p341_p4), %vm3023_vm13, %v496_v39 }
 0x2be   : > { %v397_v40 = vld [vmem:[#allocation2] sm:$0xff] (%p341_p4) }
 0x2bf   : > { %2147 = vmatmul.mubr.msk.f32.vlgmr.msra.gmra.mxu1 (%p341_p4), %vm3026_vm3, %v397_v40 }
 0x2c0   : > { %2150 = vmatpush3.msk.msra.mxu1 (%p341_p4), %vm519_vm8, %v2418_v4  ;;  %2151 = vmatprep.mubr.msk.f32.mxu1 (%p341_p4), %vm3024_vm7, %v2337_v2 }
 0x2c1   : > { %2154 = vmatprep.subr.bf16.mxu1 (%p341_p4), %v2337_v2 }
 0x33f   : > { %343 = sbr.rel (!%p341_p4) target bundleno = 18 (0x12), region = 101 }
 0x343   : >> { %v396_v6 = vpop.xlane.xlu1 %395  }
 0x37f   : > { %v2464_v41 = vpop.f32.mrf.mxu1 }
 0x380   : > { %476 = vst.msk [vmem:[%s2416_s20] sm:$0xff] %vm3025_vm9, %v2464_v41  ;;  %2152 = vmatmul.mubr.msk.f32.vlgmr.msra.gmra.mxu1 %vm3025_vm9, %v2464_v41  ;;  %v512_v42 = vmul.f32 %v2464_v41, %v2464_v41 }
 0x381   : > { %v2148_v43 = vpop.f32.mrf.mxu1  ;;  %2162 = vmatprep.mubr.msk.bf16.mxu1 %vm3024_vm7, %v2337_v2  ;;  %2155 = vmatpush3.bf16.msk.msra.mxu1 %vm2012_vm14, %v2341_v50 }
 0x382   : > { %v513_v44 = vsel %vm3025_vm9, %v512_v42, 0.0  ;;  %2156 = vmatprep.subr.bf16.mxu1 %v2337_v2  ;;  %v495_v43 = vld [vmem:[%s3019_s5 + $0x48] sm:$0xff] }
 0x383   : > { %514 = vadd.xlane.f32.xlu0 %v513_v44  ;;  %2225 = vmatprep.subr.msk.mxu0 %vm3023_vm13, %v495_v43 }
 0x384   : > { %2226 = vmatpush3.xpose.msk.msra.mxu0 %vm3023_vm13, %v495_v43 }
 0x385   : > { %2157 = vmatpush3.bf16.msk.msra.mxu1 %vm2014_vm15, %v2341_v50  ;;  %2227 = vmatprep.subr.msk.mxu0 %vm3023_vm13, %v494_v48 }
 0x386   : > { %2158 = vmatprep.subr.bf16.mxu1 %v2337_v2 }
 0x388   : > { %2228 = vmatpush3.xpose.msk.msra.mxu0 %vm3023_vm13, %v494_v48 }
 0x389   : > { %2159 = vmatpush3.bf16.msk.msra.mxu1 %vm2016_vm4, %v2341_v50  ;;  %2229 = vmatprep.subr.msk.mxu0 %vm3023_vm13, %v493_v51 }
 0x38a   : > { %2160 = vmatprep.subr.bf16.mxu1 %v2337_v2 }
 0x38c   : > { %2230 = vmatpush3.xpose.msk.msra.mxu0 %vm3023_vm13, %v493_v51 }
 0x38d   : > { %2161 = vmatpush3.bf16.msk.msra.mxu1 %vm2018_vm10, %v2341_v50 }
 0x38e   : > { %2166 = vmatprep.subr.msk.mxu1 %vm1099_vm11, %v2420_v5 }
 0x40c   : > { %v515_v62 = vpop.xlane.xlu0 %514 }
 0x40d   : > { %v592_v0 = vadd.f32 %v515_v62, %v511_v61 }
 0x440   : > { %v588_v63 = vpop.f32.mrf.mxu1 }
 0x441   : > { %v593_v3 = vmul.f32 2.0, %v588_v63 }
 0x442   : > { %v2153_v6 = vpop.f32.mrf.mxu1 }
 0x443   : > { %v594_v7 = vsub.f32 %v592_v0, %v593_v3 }
 0x445   : > { %vm2503_vm12 = vcmp.lt.f32.partialorder %v594_v7, 0.0625 }
 0x446   : > { %v2003_v9 = vsel %vm2503_vm12, 1.0, %v2337_v2  ;;  %v684_v10 = vsel %vm2503_vm12, %v2398_v1, 64 }
 0x447   : > { %v680_v11 = vsel %vm3026_vm3, %v2003_v9, 0.0  ;;  %v635_v12 = vpack.c.bf16 %v2003_v9, %v2003_v9  ;;  %v685_v13 = vsel %vm3026_vm3, %v684_v10, 2147483647 }
 0x448   : > { %681 = vadd.xlane.f32.xlu1 %v680_v11  ;;  %v687_v15 = vshra.s32 %v685_v13, 16  ;;  %v686_v22 = vand.u32 65535, %v685_v13  ;;  %v2634_v11 = vsub.s32 0, %v2477_v45  ;;  %v914_v13 = vsub.s32 1, %v2477_v45 }
 0x449   : > { %2163 = vmatmul.mubr.msk.bf16.vlgmr.msra.gmra.mxu1 %vm3026_vm3, %v635_v12 }
 0x44a   : > { %v689_v16 = vcvt.s32.f32 %v687_v15  ;;  %2167 = vmatpush3.msk.msra.mxu1 %vm1099_vm11, %v2420_v5  ;;  %2168 = vmatprep.mubr.msk.f32.mxu1 %vm1086_vm2, %v481_v14  ;;  %v484_v5 = vld [vmem:[%s3017_s3 + $0x18] sm:$0xff]  ;;  %v688_v24 = vcvt.s32.f32 %v686_v22  ;;  %v918_v15 = vsub.s32 2, %v2477_v45 }
 0x44b   : > { %2174 = vmatprep.subr.msk.mxu1 %vm519_vm8, %v2418_v4 }
 0x44c   : > { %690 = vmin.xlane.f32.xlu0 %v689_v16 }
 0x451   : > { %2169 = vmatmul.mubr.msk.f32.vlgmr.msra.gmra.mxu1 %vm1086_vm2, %v482_v17  ;;  %v926_v17 = vsub.s32 4, %v2477_v45 }
 0x452   : > { %2171 = vmatprep.mubr.msk.f32.mxu1 %vm1086_vm2, %v483_v18  ;;  %2175 = vmatpush3.msk.msra.mxu1 %vm519_vm8, %v2418_v4  ;;  %v2562_v4 = vld [vmem:[%s3016_s2 + $0x18] sm:$0xff] }
 0x455   : > { %2172 = vmatmul.mubr.msk.f32.gmra.mxu1 %vm1086_vm2, %v484_v5 }
 0x456   : > { %2176 = vmatprep.mubr.msk.f32.mxu1 %vm3025_vm9, %v2540_v19 }
 0x459   : > { %2177 = vmatmul.mubr.msk.f32.vlgmr.msra.gmra.mxu1 %vm3025_vm9, %v2548_v20 }
 0x45a   : > { %2179 = vmatprep.mubr.msk.f32.mxu1 %vm3025_vm9, %v2553_v21 }
 0x45d   : > { %2180 = vmatmul.mubr.msk.f32.gmra.mxu1 %vm3025_vm9, %v2562_v4 }
 0x4d1   : > { %v682_v62 = vpop.xlane.xlu1 %681 }
 0x4d2   : > { %v2263_v6 = vtrunc.f32 %v682_v62 }
 0x4d4   : > { %v2638_v14 = vcvt.f32.s32 %v2263_v6 }
 0x4d5   : > { %v2566_v23 = vpop.xlane.xlu0 %690 }
 0x4d6   : > { %vm692_vm8 = vcmp.eq.f32.partialorder %v689_v16, %v2566_v23  ;;  %v922_v16 = vsub.s32 3, %v2477_v45  ;;  %v697_v18 = vcvt.f32.s32 %v2566_v23  ;;  %vm700_vm1 = vcmp.gt.s32.totalorder %v2638_v14, 0 }
 0x4d7   : > { %v693_v25 = vsel %vm692_vm8, %v688_v24, inf  ;;  %v930_v24 = vsub.s32 5, %v2477_v45  ;;  %v911_v23 = vrot.slane %v2638_v14, %v2634_v11  ;;  %v2658_v33 = vrot.slane %v2638_v14, %v918_v15 }
 0x4d8   : > { %694 = vmin.xlane.f32.xlu1 %v693_v25 }
 0x509   : > { %v673_v28 = vpop.f32.mrf.mxu1 }
 0x50a   : > { %v2261_v53 = vtrunc.f32 %v673_v28 }
 0x50b   : > { %v2164_v29 = vpop.f32.mrf.mxu1 }
 0x50c   : > { %v2262_v54 = vcvt.f32.s32 %v2261_v53 }
 0x50d   : > { %v676_v31 = vpop.f32.mrf.mxu1 }
 0x50e   : > { %vm703_vm14 = vcmp.lt.s32.totalorder %v2262_v54, 8  ;;  %v770_v0 = vrot.slane %v2262_v54, %v2627_v60  ;;  %v763_v9 = vcombine.high %v2262_v54, %v2262_v54  ;;  %v938_v31 = vsub.s32 7, %v2477_v45 }
 0x50f   : > { %v2165_v32 = vpop.f32.mrf.mxu1  ;;  %vm704_vm15 = vmand %vm2503_vm12, %vm703_vm14 }
 0x510   : > { %v705_v59 = vsel %vm704_vm15, 1, %v2343_v58  ;;  %v778_v8 = vcombine.high %v770_v0, %v770_v0  ;;  %v786_v5 = vrot.slane %v770_v0, %v2627_v60  ;;  %v777_v25 = vrot.slane %v763_v9, %v2627_v60 }
 0x511   : > { %v2170_v34 = vpop.f32.mrf.mxu1  ;;  %v713_v61 = vrot.slane %v705_v59, %v2627_v60  ;;  %v706_v63 = vcombine.high %v705_v59, %v705_v59  ;;  %v2655_v32 = vrot.slane %v2638_v14, %v914_v13  ;;  %v3038_v9 = vmov 0 }
 0x512   : > { %v800_v26 = vrot.slane %v778_v8, %v2627_v60  ;;  %v779_v39 = vcombine.high %v777_v25, %v777_v25  ;;  %v815_v43 = vrot.slane %v786_v5, %v2634_v11 }
 0x513   : > { %v1169_v35 = vpop.f32.mrf.mxu1  ;;  %v721_v3 = vcombine.high %v713_v61, %v713_v61  ;;  %v720_v7 = vrot.slane %v706_v63, %v2627_v60  ;;  %v729_v10 = vrot.slane %v713_v61, %v2627_v60 }
 0x514   : > { %v819_v48 = vrot.slane %v800_v26, %v2634_v11  ;;  %v807_v56 = vrot.slane %v779_v39, %v2627_v60  ;;  %vm2684_vm2 = vcmp.eq.s32.totalorder %v815_v43, %v2477_v45 }
 0x515   : > { %v2173_v37 = vpop.f32.mrf.mxu1  ;;  %v743_v12 = vrot.slane %v721_v3, %v2627_v60  ;;  %v736_v22 = vrot.slane %v720_v7, %v2627_v60  ;;  %vm755_vm0 = vcmp.ne.s32.totalorder %v729_v10, 0  ;;  %v751_v28 = vcombine.high %v729_v10, %v729_v10 }
 0x516   : > { %v722_v30 = vcombine.high %v720_v7, %v720_v7  ;;  %v852_v36 = vsel %vm755_vm0, 1, %v2343_v58  ;;  %vm2697_vm14 = vcmp.eq.s32.totalorder %v819_v48, %v2477_v45  ;;  %v835_v15 = vrot.slane %v807_v56, %v2634_v11 }
 0x517   : > { %v1179_v38 = vpop.f32.mrf.mxu1  ;;  %v753_v29 = vcombine.high %v743_v12, %v743_v12  ;;  %vm756_vm4 = vcmp.ne.s32.totalorder %v743_v12, 0  ;;  %vm757_vm5 = vcmp.ne.s32.totalorder %v751_v28, 0  ;;  %vm759_vm10 = vcmp.ne.s32.totalorder %v736_v22, 0 }
 0x518   : > { %v853_v51 = vsel %vm756_vm4, 1, %v2343_v58  ;;  %v854_v53 = vsel %vm757_vm5, 1, %v2343_v58  ;;  %v856_v59 = vsel %vm759_vm10, 1, %v2343_v58  ;;  %v3039_v9 = vsel %vm2697_vm14, 4294967295, %v3038_v9 }
 0x519   : > { %v2178_v40 = vpop.f32.mrf.mxu1  ;;  %vm758_vm6 = vcmp.ne.s32.totalorder %v753_v29, 0  ;;  %v867_v0 = vrot.slane %v853_v51, %v2634_v11  ;;  %v871_v8 = vrot.slane %v854_v53, %v2634_v11  ;;  %v879_v13 = vrot.slane %v856_v59, %v2634_v11  ;;  %v487_v29 = vld [vmem:[%s3019_s5 + $0x8] sm:$0xff] }
 0x51a   : > { %v1272_v50 = vadd.f32 %v2178_v40, %v2170_v34  ;;  %v2661_v34 = vrot.slane %v2638_v14, %v922_v16  ;;  %v810_v40 = vcombine.high %v800_v26, %v800_v26  ;;  %v855_v55 = vsel %vm758_vm6, 1, %v2343_v58 }
 0x51b   : > { %v1266_v42 = vpop.f32.mrf.mxu1  ;;  %v875_v10 = vrot.slane %v855_v55, %v2634_v11  ;;  %vm2717_vm5 = vcmp.ge.s32.totalorder %v2477_v45, %v911_v23  ;;  %vm2721_vm6 = vcmp.eq.s32.totalorder %v867_v0, 1  ;;  %v3042_v26 = vmov 0 }
 0x51c   : > { %v1267_v52 = vadd.f32 %v1266_v42, %v1169_v35  ;;  %v698_v35 = vshll.u32 %v697_v18, 16  ;;  %v2665_v42 = vrot.slane %v2638_v14, %v926_v17  ;;  %v2678_v54 = vrot.slane %v810_v40, %v2634_v11 }
 0x51d   : > { %v2181_v44 = vpop.f32.mrf.mxu1  ;;  %v3043_v26 = vsel %vm2721_vm6, 4294967295, %v3042_v26  ;;  %vm2728_vm10 = vcmp.eq.s32.totalorder %v871_v8, 1  ;;  %v3048_v23 = vmov 0  ;;  %vm2747_vm13 = vcmp.eq.s32.totalorder %v879_v13, 1 }
 0x51e   : > { %v1282_v46 = vadd.f32 %v2181_v44, %v2173_v37  ;;  %v808_v37 = vcombine.high %v786_v5, %v786_v5  ;;  %v750_v44 = vrot.slane %v722_v30, %v2627_v60  ;;  %v811_v5 = vcombine.high %v807_v56, %v807_v56  ;;  %v486_v30 = vld [vmem:[%s3019_s5] sm:$0xff] }
 0x51f   : > { %v1276_v47 = vpop.f32.mrf.mxu1  ;;  %vm2752_vm7 = vcmp.eq.s32.totalorder %v835_v15, %v2477_v45  ;;  %v3056_v53 = vmov 0 }
 0x520   : > { %2182 = vmatprep.subr.msk.mxu1 %vm3026_vm3, %v1282_v46  ;;  %v1277_v49 = vadd.f32 %v1276_v47, %v1179_v38  ;;  %v752_v38 = vcombine.high %v736_v22, %v736_v22  ;;  %v863_v47 = vrot.slane %v852_v36, %v2634_v11  ;;  %vm760_vm12 = vcmp.ne.s32.totalorder %v750_v44, 0 }
 0x521   : > { %2183 = vmatpush3.xpose.msk.msra.mxu1 %vm3026_vm3, %v1282_v46  ;;  %v754_v61 = vcombine.high %v750_v44, %v750_v44  ;;  %v857_v16 = vsel %vm760_vm12, 1, %v2343_v58  ;;  %v3054_v44 = vmov 0 }
 0x522   : > { %2184 = vmatprep.subr.msk.mxu1 %vm3026_vm3, %v1277_v49  ;;  %vm761_vm11 = vcmp.ne.s32.totalorder %v752_v38, 0  ;;  %vm2688_vm8 = vcmp.eq.s32.totalorder %v863_v47, 1 }
 0x523   : > { %v858_v6 = vsel %vm761_vm11, 1, %v2343_v58  ;;  %vm762_vm4 = vcmp.ne.s32.totalorder %v754_v61, 0  ;;  %vm2732_vm11 = vcmp.eq.s32.totalorder %v875_v10, 1  ;;  %v3059_v61 = vmov 0 }
 0x524   : > { %v887_v18 = vrot.slane %v858_v6, %v2634_v11  ;;  %v859_v39 = vsel %vm762_vm4, 1, %v2343_v58 }
 0x525   : > { %2185 = vmatpush3.xpose.msk.msra.mxu1 %vm3026_vm3, %v1277_v49  ;;  %v793_v49 = vrot.slane %v777_v25, %v2627_v60  ;;  %v891_v55 = vrot.slane %v859_v39, %v2634_v11 }
 0x526   : > { %2186 = vmatprep.subr.msk.mxu1 %vm3026_vm3, %v1272_v50  ;;  %vm2756_vm9 = vcmp.eq.s32.totalorder %v887_v18, 1 }
 0x527   : > { %v809_v3 = vcombine.high %v793_v49, %v793_v49  ;;  %v831_v12 = vrot.slane %v793_v49, %v2634_v11  ;;  %v3055_v44 = vsel %vm2756_vm9, 4294967295, %v3054_v44 }
 0x529   : > { %2187 = vmatpush3.xpose.msk.msra.mxu1 %vm3026_vm3, %v1272_v50  ;;  %v2726_v28 = vrot.slane %v809_v3, %v2634_v11  ;;  %vm2737_vm12 = vcmp.eq.s32.totalorder %v831_v12, %v2477_v45 }
 0x52a   : > { %2188 = vmatprep.subr.msk.mxu1 %vm3026_vm3, %v1267_v52  ;;  %v3049_v23 = vsel %vm2737_vm12, 4294967295, %v3048_v23 }
 0x52d   : > { %2189 = vmatpush3.xpose.msk.msra.mxu1 %vm3026_vm3, %v1267_v52  ;;  %v2674_v52 = vrot.slane %v808_v37, %v2634_v11 }
 0x52e   : > { %2202 = vmatprep.subr.mxu1 %v2337_v2 }
 0x561   : > { %v695_v46 = vpop.xlane.xlu1 %694 }
 0x562   : > { %v696_v50 = vcvt.f32.s32 %v695_v46  ;;  %v2761_v46 = vrot.slane %v811_v5, %v2634_v11 }
 0x564   : > { %v699_v57 = vadd.s32 %v698_v35, %v696_v50  ;;  %v883_v35 = vrot.slane %v857_v16, %v2634_v11 }
 0x566   : > { %v701_v7 = vsel %vm700_vm1, %v699_v57, 0  ;;  %vm2774_vm0 = vcmp.eq.s32.totalorder %v883_v35, 1 }
 0x567   : > { %vm702_vm15 = vcmp.eq.s32.totalorder %v2398_v1, %v701_v7  ;;  %v3057_v53 = vsel %vm2774_vm0, 4294967295, %v3056_v53 }
 0x568   : > { %v948_v17 = vsel %vm702_vm15, 1, %v2343_v58 }
 0x569   : > { %v949_v1 = vcombine.high %v948_v17, %v948_v17  ;;  %v956_v22 = vrot.slane %v948_v17, %v2627_v60 }
 0x56b   : > { %v963_v36 = vrot.slane %v949_v1, %v2627_v60  ;;  %v964_v37 = vcombine.high %v956_v22, %v956_v22  ;;  %v972_v38 = vrot.slane %v956_v22, %v2627_v60 }
 0x56d   : > { %v965_v47 = vcombine.high %v963_v36, %v963_v36  ;;  %v986_v48 = vrot.slane %v964_v37, %v2627_v60  ;;  %vm998_vm4 = vcmp.ne.s32.totalorder %v972_v38, 0  ;;  %v994_v49 = vcombine.high %v972_v38, %v972_v38 }
 0x56e   : > { %v1006_v50 = vsel %vm998_vm4, 1, %v2343_v58  ;;  %v979_v51 = vrot.slane %v963_v36, %v2627_v60  ;;  %vm3058_vm4 = vcmp.eq.s32.totalorder %v2674_v52, %v2477_v45  ;;  %v3062_v52 = vmov 0 }
 0x56f   : > { %v1017_v56 = vrot.slane %v1006_v50, %v2634_v11  ;;  %vm999_vm3 = vcmp.ne.s32.totalorder %v986_v48, 0  ;;  %vm1000_vm9 = vcmp.ne.s32.totalorder %v994_v49, 0  ;;  %v996_v57 = vcombine.high %v986_v48, %v986_v48  ;;  %vm2790_vm1 = vmand %vm2728_vm10, %vm3058_vm4 }
 0x570   : > { %v1007_v59 = vsel %vm999_vm3, 1, %v2343_v58  ;;  %v3060_v61 = vsel %vm2790_vm1, 4294967295, %v3059_v61  ;;  %v1008_v0 = vsel %vm1000_vm9, 1, %v2343_v58  ;;  %vm1002_vm0 = vcmp.ne.s32.totalorder %v979_v51, 0 }
 0x571   : > { %v993_v3 = vrot.slane %v965_v47, %v2627_v60  ;;  %vm1046_vm15 = vcmp.eq.s32.totalorder %v1017_v56, 1  ;;  %v1021_v6 = vrot.slane %v1007_v59, %v2634_v11  ;;  %v1025_v7 = vrot.slane %v1008_v0, %v2634_v11 }
 0x572   : > { %vm3061_vm3 = vcmp.eq.s32.totalorder %v2678_v54, %v2477_v45  ;;  %vm1001_vm10 = vcmp.ne.s32.totalorder %v996_v57, 0  ;;  %vm1054_vm9 = vmand %vm2717_vm5, %vm1046_vm15  ;;  %v1010_v10 = vsel %vm1002_vm0, 1, %v2343_v58  ;;  %v995_v54 = vcombine.high %v979_v51, %v979_v51 }
 0x573   : > { %vm2803_vm14 = vmand %vm2732_vm11, %vm3061_vm3  ;;  %v1009_v8 = vsel %vm1001_vm10, 1, %v2343_v58  ;;  %vm1003_vm1 = vcmp.ne.s32.totalorder %v993_v3, 0  ;;  %vm2820_vm6 = vcmp.eq.s32.totalorder %v1025_v7, 1  ;;  %v1033_v15 = vrot.slane %v1010_v10, %v2634_v11  ;;  %v2056_v7 = vld [vmem:[%s3018_s4] ss:$0 sm:$0xff] }
 0x574   : > { %v3063_v52 = vsel %vm2803_vm14, 4294967295, %v3062_v52  ;;  %vm3064_vm11 = vmand %vm2688_vm8, %vm2684_vm2  ;;  %vm1047_vm14 = vcmp.eq.s32.totalorder %v1021_v6, 1  ;;  %v1029_v13 = vrot.slane %v1009_v8, %v2634_v11  ;;  %vm3067_vm0 = vcmp.ge.s32.totalorder %v2477_v45, %v2655_v32 }
 0x575   : > { %vm1062_vm3 = vmor %vm3064_vm11, %vm1054_vm9  ;;  %vm3068_vm2 = vnez %v3057_v53  ;;  %v1011_v62 = vsel %vm1003_vm1, 1, %v2343_v58  ;;  %vm1004_vm15 = vcmp.ne.s32.totalorder %v995_v54, 0  ;;  %v997_v63 = vcombine.high %v993_v3, %v993_v3 }
 0x576   : > { %v2021_v16 = vsel %vm1062_vm3, 1.0, %v2337_v2  ;;  %vm1055_vm5 = vmand %vm3067_vm0, %vm1047_vm14  ;;  %vm3069_vm10 = vcmask 523264   ;;  %vm3070_vm9 = vnez %v3043_v26  ;;  %vm3071_vm11 = vnez %v3039_v9 }
 0x577   : > { %2190 = vmatprep.mubr.msk.f32.mxu1 %vm3069_vm10, %v2021_v16  ;;  %vm3072_vm3 = vmand %vm3070_vm9, %vm3071_vm11  ;;  %vm2841_vm12 = vcmp.eq.s32.totalorder %v1029_v13, 1  ;;  %v1037_v17 = vrot.slane %v1011_v62, %v2634_v11  ;;  %v1012_v18 = vsel %vm1004_vm15, 1, %v2343_v58  ;;  %vm2847_vm14 = vcmp.eq.s32.totalorder %v891_v55, 1 }
 0x578   : > { %vm1063_vm4 = vmor %vm3072_vm3, %vm1055_vm5  ;;  %vm3077_vm1 = vcmp.ge.s32.totalorder %v2477_v45, %v2658_v33  ;;  %vm943_vm5 = vcmp.ge.s32.totalorder %v2477_v45, %v2661_v34  ;;  %v931_v9 = vrot.slane %v2638_v14, %v930_v24  ;;  %vm3078_vm15 = vcmp.eq.s32.totalorder %v2726_v28, %v2477_v45 }
 0x579   : > { %v2022_v1 = vsel %vm1063_vm4, 1.0, %v2337_v2  ;;  %vm1056_vm0 = vmand %vm3077_vm1, %vm2820_vm6  ;;  %vm3079_vm10 = vnez %v3055_v44  ;;  %vm1005_vm4 = vcmp.ne.s32.totalorder %v997_v63, 0  ;;  %vm3082_vm11 = vcmask 523264  }
 0x57a   : > { %vm2867_vm9 = vmand %vm3079_vm10, %vm3078_vm15  ;;  %2191 = vmatmul.mubr.msk.f32.vlgmr.msra.gmra.mxu1 %vm3082_vm11, %v2022_v1  ;;  %vm3083_vm6 = vnez %v3060_v61  ;;  %vm2874_vm1 = vcmp.eq.s32.totalorder %v1033_v15, 1  ;;  %v1041_v24 = vrot.slane %v1012_v18, %v2634_v11  ;;  %vm851_vm8 = vcmp.eq.s32.totalorder %v2761_v46, %v2477_v45 }
 0x57b   : > { %vm1064_vm3 = vmor %vm3083_vm6, %vm1056_vm0  ;;  %v1013_v34 = vsel %vm1005_vm4, 1, %v2343_v58  ;;  %vm3086_vm15 = vcmask 23552   ;;  %vm3089_vm4 = vnez %v3063_v52 }
 0x57c   : > { %2203 = vmatpush3.xpose.msk.msra.mxu1 %vm3086_vm15, %v2562_v4  ;;  %v2023_v25 = vsel %vm1064_vm3, 1.0, %v2337_v2  ;;  %vm1057_vm10 = vmand %vm943_vm5, %vm2841_vm12  ;;  %vm944_vm15 = vcmp.ge.s32.totalorder %v2477_v45, %v2665_v42  ;;  %vm1051_vm3 = vcmp.eq.s32.totalorder %v1037_v17, 1  ;;  %v935_v4 = vrot.slane %v2638_v14, %v934_v27 }
 0x57d   : > { %vm2889_vm0 = vmand %vm2847_vm14, %vm851_vm8  ;;  %2193 = vmatprep.mubr.msk.f32.mxu1 %vm3082_vm11, %v2023_v25  ;;  %2204 = vmatprep.subr.mxu1 %v2337_v2  ;;  %v1045_v58 = vrot.slane %v1013_v34, %v2634_v11  ;;  %vm3091_vm14 = vnez %v3049_v23  ;;  %v939_v27 = vrot.slane %v2638_v14, %v938_v31 }
 0x57e   : > { %vm1065_vm6 = vmor %vm3089_vm4, %vm1057_vm10  ;;  %vm1052_vm4 = vcmp.eq.s32.totalorder %v1041_v24, 1 }
 0x57f   : > { %v2024_v28 = vsel %vm1065_vm6, 1.0, %v2337_v2  ;;  %vm1058_vm12 = vmand %vm944_vm15, %vm2874_vm1  ;;  %vm3093_vm6 = vcmask 23552  }
 0x580   : > { %vm3090_vm8 = vmmov %vm3082_vm11  ;;  %vm945_vm11 = vcmp.ge.s32.totalorder %v2477_v45, %v931_v9  ;;  %2205 = vmatpush3.xpose.msk.msra.mxu1 %vm3093_vm6, %v2553_v21 }
 0x581   : > { %2194 = vmatmul.mubr.msk.f32.gmra.mxu1 %vm3090_vm8, %v2024_v28  ;;  %vm3092_vm5 = vmand %vm2747_vm13, %vm3091_vm14  ;;  %2206 = vmatprep.subr.mxu1 %v2337_v2  ;;  %vm1053_vm14 = vcmp.eq.s32.totalorder %v1045_v58, 1 }
 0x582   : > { %vm1066_vm10 = vmor %vm3092_vm5, %vm1058_vm12 }
 0x583   : > { %v2025_v42 = vsel %vm1066_vm10, 1.0, %v2337_v2  ;;  %vm1059_vm1 = vmand %vm945_vm11, %vm1051_vm3  ;;  %vm947_vm10 = vcmp.ge.s32.totalorder %v2477_v45, %v939_v27  ;;  %vm3097_vm11 = vcmask 23552  }
 0x584   : > { %vm3094_vm15 = vmmov %vm3090_vm8  ;;  %vm946_vm8 = vcmp.ge.s32.totalorder %v2477_v45, %v935_v4  ;;  %2207 = vmatpush3.xpose.msk.msra.mxu1 %vm3097_vm11, %v2548_v20  ;;  %v492_v45 = vld [vmem:[%s3019_s5 + $0x30] sm:$0xff]  ;;  %v491_v20 = vld [vmem:[%s3019_s5 + $0x28] sm:$0xff] }
 0x585   : > { %2196 = vmatprep.mubr.msk.f32.mxu1 %vm3094_vm15, %v2025_v42  ;;  %vm3095_vm13 = vmand %vm3068_vm2, %vm2752_vm7  ;;  %2208 = vmatprep.subr.mxu1 %v2337_v2 }
 0x586   : > { %vm1067_vm12 = vmor %vm3095_vm13, %vm1059_vm1 }
 0x587   : > { %v2026_v14 = vsel %vm1067_vm12, 1.0, %v2337_v2  ;;  %vm1060_vm5 = vmand %vm946_vm8, %vm1052_vm4  ;;  %vm3103_vm12 = vcmask 261120  }
 0x588   : > { %vm3096_vm6 = vmmov %vm3094_vm15  ;;  %vm3101_vm15 = vmmov 0   ;;  %2231 = vmatprep.subr.msk.mxu0 %vm3103_vm12, %v492_v45 }
 0x589   : > { %2197 = vmatmul.mubr.msk.f32.gmra.mxu1 %vm3096_vm6, %v2026_v14  ;;  %vm1068_vm3 = vmor %vm2867_vm9, %vm1060_vm5 }
 0x58a   : > { %v2027_v21 = vsel %vm1068_vm3, 1.0, %v2337_v2  ;;  %vm1061_vm7 = vmand %vm947_vm10, %vm1053_vm14 }
 0x58b   : > { %vm3098_vm2 = vmmov %vm3096_vm6 }
 0x58c   : > { %2199 = vmatprep.mubr.msk.f32.mxu1 %vm3098_vm2, %v2027_v21  ;;  %vm1069_vm4 = vmor %vm2889_vm0, %vm1061_vm7 }
 0x58d   : > { %v2028_v31 = vsel %vm1069_vm4, 1.0, %v2337_v2  ;;  %vm3099_vm1 = vmmov %vm3098_vm2 }
 0x58e   : > { %2200 = vmatmul.mubr.msk.f32.gmra.mxu1 %vm3099_vm1, %v2028_v31  ;;  %vm3100_vm9 = vmmov %vm3097_vm11  ;;  %v2057_v31 = vld [vmem:[%s3020_s6] ss:$0 sm:$0xff] }
 0x58f   : > { %2209 = vmatpush3.xpose.msk.msra.mxu1 %vm3100_vm9, %v2540_v19  ;;  %2210 = vmatprep.mubr.msk.f32.mxu1 %vm3101_vm15, %v2337_v2  ;;  %vm3102_vm13 = vmmov %vm3100_vm9  ;;  %v490_v2 = vld [vmem:[%s3019_s5 + $0x20] sm:$0xff]  ;;  %v488_v19 = vld [vmem:[%s3019_s5 + $0x10] sm:$0xff] }
 0x590   : > { %vm3104_vm0 = vmmov %vm3103_vm12 }
 0x591   : > { %2232 = vmatpush3.xpose.msk.msra.mxu0 %vm3104_vm0, %v492_v45  ;;  %vm3105_vm8 = vmmov %vm3104_vm0 }
 0x592   : > { %2211 = vmatmul.mubr.msk.f32.vlgmr.msra.gmra.mxu1 %vm3102_vm13, %v2464_v41  ;;  %2233 = vmatprep.subr.msk.mxu0 %vm3105_vm8, %v491_v20  ;;  %vm3106_vm14 = vmmov %vm3104_vm0  ;;  %v489_v41 = vld [vmem:[%s3019_s5 + $0x18] sm:$0xff] }
 0x593   : > { %vm3107_vm5 = vmmov %vm3104_vm0 }
 0x594   : > { %vm3108_vm6 = vmmov %vm3104_vm0 }
 0x595   : > { %2234 = vmatpush3.xpose.msk.msra.mxu0 %vm3106_vm14, %v491_v20  ;;  %vm3109_vm3 = vmmov %vm3104_vm0 }
 0x596   : > { %2235 = vmatprep.subr.msk.mxu0 %vm3107_vm5, %v490_v2  ;;  %vm3110_vm10 = vmmov %vm3104_vm0 }
 0x597   : > { %vm3111_vm11 = vmmov %vm3104_vm0 }
 0x598   : > { %vm3112_vm7 = vmmov %vm3104_vm0 }
 0x599   : > { %2236 = vmatpush3.xpose.msk.msra.mxu0 %vm3108_vm6, %v490_v2  ;;  %vm3113_vm2 = vmmov %vm3104_vm0 }
 0x59a   : > { %2237 = vmatprep.subr.msk.mxu0 %vm3109_vm3, %v489_v41  ;;  %vm3114_vm4 = vmmov %vm3104_vm0  ;;  %vm1864_vm3 = vcmask 1041409  }
 0x59b   : > { %vm3115_vm1 = vmmov %vm3104_vm0 }
 0x59c   : > { %vm3116_vm9 = vmmov %vm3104_vm0 }
 0x59d   : > { %2238 = vmatpush3.xpose.msk.msra.mxu0 %vm3110_vm10, %v489_v41  ;;  %vm3117_vm15 = vmmov %vm3104_vm0  ;;  %vm1866_vm10 = vcmask 1042434  }
 0x59e   : > { %2239 = vmatprep.subr.msk.mxu0 %vm3111_vm11, %v488_v19  ;;  %vm3118_vm13 = vmmov %vm3104_vm0  ;;  %vm1868_vm11 = vcmask 1043459  }
 0x59f   : > { %vm3119_vm12 = vmmov %vm3104_vm0 }
 0x5a0   : > { %vm3120_vm8 = vmmov %vm3104_vm0 }
 0x5a1   : > { %2240 = vmatpush3.xpose.msk.msra.mxu0 %vm3112_vm7, %v488_v19  ;;  %vm3121_vm14 = vmmov %vm3104_vm0  ;;  %vm1870_vm7 = vcmask 1044484  }
 0x5a2   : > { %2241 = vmatprep.subr.msk.mxu0 %vm3113_vm2, %v487_v29  ;;  %vm3122_vm5 = vmmov %vm3104_vm0  ;;  %vm1872_vm2 = vcmask 1045509  }
 0x5a3   : > { %vm3123_vm6 = vmmov %vm3104_vm0 }
 0x5a5   : > { %2242 = vmatpush3.xpose.msk.msra.mxu0 %vm3114_vm4, %v487_v29  ;;  %vm1874_vm4 = vcmask 1046534  }
 0x5a6   : > { %2243 = vmatprep.subr.msk.mxu0 %vm3115_vm1, %v486_v30  ;;  %vm1876_vm1 = vcmask 1047559  }
 0x5a9   : > { %2244 = vmatpush3.xpose.msk.msra.mxu0 %vm3116_vm9, %v486_v30 }
 0x63a   : > { %v2192_v23 = vpop.f32.mrf.mxu1 }
 0x63c   : > { %v1387_v35 = vpop.f32.mrf.mxu1 }
 0x641   : > { %v2195_v36 = vpop.f32.mrf.mxu1 }
 0x643   : > { %v1397_v37 = vpop.f32.mrf.mxu1 }
 0x649   : > { %v2198_v38 = vpop.f32.mrf.mxu1 }
 0x64b   : > { %v1407_v39 = vpop.f32.mrf.mxu1 }
 0x64e   : > { %v2201_v40 = vpop.f32.mrf.mxu1 }
 0x650   : > { %v1417_v43 = vpop.f32.mrf.mxu1 }
 0x652   : > { %v1492_v44 = vpop.f32.mrf.mxu1 }
 0x653   : > { %v1497_v46 = vcombine.high %v1492_v44, %v1492_v44  ;;  %v1504_v47 = vrot.slane %v1492_v44, %v2627_v60 }
 0x654   : > { %v2212_v48 = vpop.f32.mrf.mxu1 }
 0x655   : > { %v1511_v49 = vrot.slane %v1497_v46, %v2627_v60  ;;  %v1512_v50 = vcombine.high %v1504_v47, %v1504_v47  ;;  %v1520_v51 = vrot.slane %v1504_v47, %v2627_v60 }
 0x657   : > { %v1513_v53 = vcombine.high %v1511_v49, %v1511_v49  ;;  %v1527_v55 = vrot.slane %v1511_v49, %v2627_v60  ;;  %v1534_v56 = vrot.slane %v1512_v50, %v2627_v60  ;;  %v1542_v57 = vcombine.high %v1520_v51, %v1520_v51 }
 0x658   : > { %v1549_v59 = vrot.slane %v1520_v51, %v2634_v11 }
 0x659   : > { %v1541_v61 = vrot.slane %v1513_v53, %v2627_v60  ;;  %v1543_v0 = vcombine.high %v1527_v55, %v1527_v55  ;;  %v1544_v3 = vcombine.high %v1534_v56, %v1534_v56  ;;  %v1553_v6 = vrot.slane %v1534_v56, %v2634_v11 }
 0x65a   : > { %v1557_v52 = vrot.slane %v1542_v57, %v2634_v11  ;;  %v1565_v8 = vrot.slane %v1527_v55, %v2634_v11  ;;  %v1586_v10 = vsub.f32 %v1387_v35, %v1549_v59 }
 0x65b   : > { %v1545_v54 = vcombine.high %v1541_v61, %v1541_v61  ;;  %v1561_v12 = vrot.slane %v1544_v3, %v2634_v11  ;;  %v1569_v13 = vrot.slane %v1541_v61, %v2634_v11  ;;  %v1587_v15 = vsub.f32 %v2192_v23, %v1553_v6 }
 0x65c   : > { %v1588_v60 = vsub.f32 %v1397_v37, %v1557_v52  ;;  %v1600_v16 = vadd.f32 %v2056_v7, %v1586_v10  ;;  %v1573_v62 = vrot.slane %v1543_v0, %v2634_v11  ;;  %v1590_v63 = vsub.f32 %v1407_v39, %v1565_v8 }
 0x65d   : > { %v1589_v32 = vsub.f32 %v2195_v36, %v1561_v12  ;;  %v1601_v18 = vadd.f32 %v2056_v7, %v1587_v15  ;;  %v1577_v1 = vrot.slane %v1545_v54, %v2634_v11  ;;  %v1591_v24 = vsub.f32 %v2198_v38, %v1569_v13 }
 0x65e   : > { %v1608_v17 = vmax.f32 %v1600_v16, 0.0  ;;  %v1602_v5 = vadd.f32 %v2056_v7, %v1588_v60  ;;  %v1604_v34 = vadd.f32 %v2056_v7, %v1590_v63  ;;  %v1592_v25 = vsub.f32 %v1417_v43, %v1573_v62 }
 0x65f   : > { %v1609_v9 = vmax.f32 %v1601_v18, 0.0  ;;  %v1603_v33 = vadd.f32 %v2056_v7, %v1589_v32  ;;  %v1605_v4 = vadd.f32 %v2056_v7, %v1591_v24  ;;  %v1593_v58 = vsub.f32 %v2201_v40, %v1577_v1 }
 0x660   : > { %2245 = vmatprep.mubr.msk.f32.mxu0 %vm3117_vm15, %v1608_v17  ;;  %v1610_v22 = vmax.f32 %v1602_v5, 0.0  ;;  %v1612_v28 = vmax.f32 %v1604_v34, 0.0  ;;  %v1606_v27 = vadd.f32 %v2056_v7, %v1592_v25 }
 0x661   : > { %2246 = vmatmul.mubr.msk.f32.vlgmr.msra.gmra.mxu0 %vm3118_vm13, %v1609_v9  ;;  %v1611_v26 = vmax.f32 %v1603_v33, 0.0  ;;  %v1613_v11 = vmax.f32 %v1605_v4, 0.0  ;;  %v1607_v42 = vadd.f32 %v2056_v7, %v1593_v58 }
 0x662   : > { %2248 = vmatprep.mubr.msk.f32.mxu0 %vm3119_vm12, %v1610_v22  ;;  %v1614_v14 = vmax.f32 %v1606_v27, 0.0 }
 0x663   : > { %v1615_v21 = vmax.f32 %v1607_v42, 0.0 }
 0x665   : > { %2249 = vmatmul.mubr.msk.f32.gmra.mxu0 %vm3104_vm0, %v1611_v26 }
 0x666   : > { %2251 = vmatprep.mubr.msk.f32.mxu0 %vm3120_vm8, %v1612_v28 }
 0x669   : > { %2252 = vmatmul.mubr.msk.f32.gmra.mxu0 %vm3121_vm14, %v1613_v11 }
 0x66a   : > { %2254 = vmatprep.mubr.msk.f32.mxu0 %vm3122_vm5, %v1614_v14 }
 0x66d   : > { %2255 = vmatmul.mubr.msk.f32.gmra.mxu0 %vm3123_vm6, %v1615_v21 }
 0x721   : > { %v2247_v45 = vpop.f32.mrf.mxu0 }
 0x722   : > { %v1767_v20 = vadd.f32 %v2247_v45, %v2057_v31 }
 0x723   : > { %v1761_v2 = vpop.f32.mrf.mxu0 }
 0x724   : > { %v1801_v41 = vmax.f32 %v1767_v20, 0.0  ;;  %v1762_v19 = vadd.f32 %v2057_v31, %v1761_v2 }
 0x725   : > { %v2250_v29 = vpop.f32.mrf.mxu0 }
 0x726   : > { %v1814_v30 = vrot.slane %v1801_v41, 4  ;;  %v1800_v23 = vmax.f32 %v1762_v19, 0.0  ;;  %v1777_v35 = vadd.f32 %v2250_v29, %v2057_v31 }
 0x727   : > { %v1771_v36 = vpop.f32.mrf.mxu0 }
 0x728   : > { %v1815_v37 = vmax.f32 %v1801_v41, %v1814_v30  ;;  %v1808_v38 = vrot.slane %v1800_v23, 4  ;;  %v1803_v39 = vmax.f32 %v1777_v35, 0.0  ;;  %v1772_v40 = vadd.f32 %v2057_v31, %v1771_v36 }
 0x729   : > { %v2253_v43 = vpop.f32.mrf.mxu0 }
 0x72a   : > { %v1816_v44 = vrot.slane %v1815_v37, 2  ;;  %v1809_v46 = vmax.f32 %v1800_v23, %v1808_v38  ;;  %v1826_v47 = vrot.slane %v1803_v39, 4  ;;  %v1802_v48 = vmax.f32 %v1772_v40, 0.0 }
 0x72b   : > { %v1787_v49 = vadd.f32 %v2253_v43, %v2057_v31  ;;  %v1781_v50 = vpop.f32.mrf.mxu0 }
 0x72c   : > { %v1810_v51 = vrot.slane %v1809_v46, 2  ;;  %v1827_v53 = vmax.f32 %v1803_v39, %v1826_v47  ;;  %v1820_v55 = vrot.slane %v1802_v48, 4  ;;  %v1782_v57 = vadd.f32 %v2057_v31, %v1781_v50 }
 0x72d   : > { %v1805_v56 = vmax.f32 %v1787_v49, 0.0  ;;  %v2256_v59 = vpop.f32.mrf.mxu0  ;;  %v1817_v61 = vmax.f32 %v1815_v37, %v1816_v44 }
 0x72e   : > { %v1811_v0 = vmax.f32 %v1809_v46, %v1810_v51  ;;  %v1828_v3 = vrot.slane %v1827_v53, 2  ;;  %v1821_v6 = vmax.f32 %v1802_v48, %v1820_v55  ;;  %v1804_v52 = vmax.f32 %v1782_v57, 0.0 }
 0x72f   : > { %v1838_v7 = vrot.slane %v1805_v56, 4  ;;  %v1797_v8 = vadd.f32 %v2256_v59, %v2057_v31  ;;  %v1791_v10 = vpop.f32.mrf.mxu0  ;;  %v1818_v62 = vrot.slane %v1817_v61, 1 }
 0x730   : > { %v1812_v54 = vrot.slane %v1811_v0, 1  ;;  %v1822_v12 = vrot.slane %v1821_v6, 2  ;;  %v1832_v15 = vrot.slane %v1804_v52, 4  ;;  %v1792_v16 = vadd.f32 %v2057_v31, %v1791_v10 }
 0x731   : > { %v1839_v13 = vmax.f32 %v1805_v56, %v1838_v7  ;;  %v1807_v60 = vmax.f32 %v1797_v8, 0.0  ;;  %v1829_v63 = vmax.f32 %v1827_v53, %v1828_v3  ;;  %v1819_v25 = vmax.f32 %v1817_v61, %v1818_v62 }
 0x732   : > { %v1823_v32 = vmax.f32 %v1821_v6, %v1822_v12  ;;  %v1833_v18 = vmax.f32 %v1804_v52, %v1832_v15  ;;  %v1806_v1 = vmax.f32 %v1792_v16, 0.0  ;;  %v1813_v22 = vmax.f32 %v1811_v0, %v1812_v54 }
 0x733   : > { %v1840_v17 = vrot.slane %v1839_v13, 2  ;;  %v1850_v5 = vrot.slane %v1807_v60, 4  ;;  %v1830_v26 = vrot.slane %v1829_v63, 1 }
 0x734   : > { %v1824_v9 = vrot.slane %v1823_v32, 1  ;;  %v1834_v33 = vrot.slane %v1833_v18, 2  ;;  %v1844_v34 = vrot.slane %v1806_v1, 4  ;;  %v1865_v42 = vsel %vm1864_vm3, %v1819_v25, %v1813_v22 }
 0x735   : > { %v1851_v24 = vmax.f32 %v1807_v60, %v1850_v5  ;;  %v1841_v58 = vmax.f32 %v1839_v13, %v1840_v17  ;;  %v1831_v20 = vmax.f32 %v1829_v63, %v1830_v26 }
 0x736   : > { %v1825_v4 = vmax.f32 %v1823_v32, %v1824_v9  ;;  %v1835_v28 = vmax.f32 %v1833_v18, %v1834_v33  ;;  %v1845_v11 = vmax.f32 %v1806_v1, %v1844_v34 }
 0x737   : > { %v1852_v27 = vrot.slane %v1851_v24, 2  ;;  %v1842_v2 = vrot.slane %v1841_v58, 1 }
 0x738   : > { %v1836_v14 = vrot.slane %v1835_v28, 1  ;;  %v1867_v31 = vsel %vm1866_vm10, %v1825_v4, %v1865_v42  ;;  %v1846_v45 = vrot.slane %v1845_v11, 2 }
 0x739   : > { %v1853_v21 = vmax.f32 %v1851_v24, %v1852_v27  ;;  %v1869_v29 = vsel %vm1868_vm11, %v1831_v20, %v1867_v31  ;;  %v1843_v36 = vmax.f32 %v1841_v58, %v1842_v2 }
 0x73a   : > { %v1837_v41 = vmax.f32 %v1835_v28, %v1836_v14  ;;  %v1847_v19 = vmax.f32 %v1845_v11, %v1846_v45 }
 0x73b   : > { %v1854_v30 = vrot.slane %v1853_v21, 1 }
 0x73c   : > { %v1871_v23 = vsel %vm1870_vm7, %v1837_v41, %v1869_v29  ;;  %v1848_v35 = vrot.slane %v1847_v19, 1 }
 0x73d   : > { %v1855_v38 = vmax.f32 %v1853_v21, %v1854_v30  ;;  %v1873_v39 = vsel %vm1872_vm2, %v1843_v36, %v1871_v23 }
 0x73e   : > { %v1849_v37 = vmax.f32 %v1847_v19, %v1848_v35 }
 0x740   : > { %v1875_v40 = vsel %vm1874_vm4, %v1849_v37, %v1873_v39 }
 0x741   : > { %v1877_v43 = vsel %vm1876_vm1, %v1855_v38, %v1875_v40 }
 0x742   : > { %1879 = vst [vmem:[%s2411_s17] sm:$0xff] %v1877_v43 }
 0x743 PF: > { %s19_s27 = sadd.s32 1, %s2323_s27  }
 0x744   : > { %p16_p5 = scmp.ge.s32.totalorder %s19_s27, 4  }
 0x746   :  { %18 = sbr.rel (!%p16_p5) target bundleno = 1 (0x1), region = 112 }

</bundles_post_ra>
